<compile_context>
chip_gen: v7x
topology: tpu7x:2x2x1
jax: 0.10.0
libtpu: 0.0.40
codegen_flags: <defaults>
</compile_context>

<pallas_src>
import numpy as np
import jax
import jax.numpy as jnp
from jax import lax
from jax.experimental import pallas as pl
from jax.experimental.pallas import tpu as pltpu


# ------------------------------- helpers -------------------------------------

def _round_up(x, m):
    return (x + m - 1) // m * m


def bn_fold(gamma, beta, mean, var, eps=1e-5):
    scale = gamma / jnp.sqrt(var + eps)
    bias = beta - mean * scale
    return scale, bias


def _pick_row_tile(ho, wo, wp_pad, chid, stride):
    """Largest divisor of Ho whose tile keeps matmul rows <= 1024 and hidden scratch <= 8 MiB."""
    best = 1
    for th in range(1, ho + 1):
        if ho % th:
            continue
        rin = (th - 1) * stride + 3
        if th * wo <= 1024 and rin * wp_pad * chid * 4 <= 8 * 1024 * 1024:
            best = th
    return best


# ------------------------------ fused kernel ---------------------------------

def _make_fused_kernel(*, expand, shortcut, stride, th, rin, h, w, wp_pad, wo, chid):
    s = stride

    def _row_sl(k):
        return pl.ds(k, th) if s == 1 else pl.ds(k, th, stride=s)

    def _col_sl(k):
        return pl.ds(k, wo) if s == 1 else pl.ds(k, wo, stride=s)

    def kernel(*refs):
        i = 1
        xpad_ref = refs[0]
        if expand:
            w1_ref, b1_ref = refs[i], refs[i + 1]
            i += 2
        wdw_ref, b2_ref, w3_ref, b3_ref = refs[i:i + 4]
        i += 4
        if shortcut:
            res_ref = refs[i]
            i += 1
        o_ref = refs[i]
        h_ref = refs[i + 1]

        t = pl.program_id(1)
        r0 = pl.multiple_of(t * (th * s), th * s)   # first padded input row of this tile

        # ---- stage 1: 1x1 expand conv + BN + ReLU6 -> VMEM hidden buffer --------
        if expand:
            xwin = xpad_ref[0, pl.ds(r0, rin), :, :]            # (rin, wp_pad, cin)
            x2 = xwin.reshape(rin * wp_pad, xwin.shape[-1])
            hid = jnp.dot(x2, w1_ref[...], preferred_element_type=jnp.float32)
            hid = jnp.clip(hid + b1_ref[...], 0.0, 6.0)
            hid = hid.reshape(rin, wp_pad, chid)
            # Zero the spatial-padding positions of the *hidden* activation (the
            # depthwise conv's zero padding applies after the expand conv).
            rows = r0 + lax.broadcasted_iota(jnp.int32, (rin, wp_pad, 1), 0)
            cols = lax.broadcasted_iota(jnp.int32, (rin, wp_pad, 1), 1)
            valid = (rows >= 1) & (rows <= h) & (cols >= 1) & (cols <= w)
            h_ref[...] = jnp.where(valid, hid, 0.0)
        else:
            # hidden == (already zero-padded) input.
            h_ref[...] = xpad_ref[0, pl.ds(r0, rin), :, :]

        # ---- stage 2: 3x3 depthwise conv + BN + ReLU6 (taps from VMEM) ----------
        parts = []
        for kh in range(3):
            for kw in range(3):
                tap = h_ref[_row_sl(kh), _col_sl(kw), :]        # (th, wo, chid)
                parts.append(tap * wdw_ref[3 * kh + kw])
        while len(parts) > 1:                                   # pairwise tree reduce
            nxt = [a + b for a, b in zip(parts[0::2], parts[1::2])]
            if len(parts) % 2:
                nxt.append(parts[-1])
            parts = nxt
        dw = jnp.clip(parts[0] + b2_ref[...], 0.0, 6.0)         # (th, wo, chid)

        # ---- stage 3: 1x1 project conv + BN (+ residual) -------------------------
        y = jnp.dot(dw.reshape(th * wo, chid), w3_ref[...],
                    preferred_element_type=jnp.float32) + b3_ref[...]
        if shortcut:
            y = y + res_ref[...]
        o_ref[...] = y

    return kernel


# -------------------------------- wrapper ------------------------------------

def inverted_residual_forward(x_nchw, params, in_ch, out_ch, stride, expand_ratio):
    expand = expand_ratio != 1
    shortcut = (stride == 1) and (in_ch == out_ch)
    hid = in_ch * expand_ratio

    x = jnp.transpose(x_nchw, (0, 2, 3, 1)).astype(jnp.float32)   # NCHW -> NHWC
    n, h, w, _ = x.shape
    ho = (h - 1) // stride + 1
    wo = (w - 1) // stride + 1
    hp = h + 2
    wp_pad = _round_up(w + 2, 8)   # extra right pad keeps in-kernel reshapes 8-aligned
    xpad = jnp.pad(x, ((0, 0), (1, 1), (1, wp_pad - w - 1), (0, 0)))

    # Fold eval-mode BN into the conv weights; kernel only adds a bias.
    if expand:
        s1, b1 = bn_fold(*params["bn1"])
        w1f = (params["w1"] * s1[None, :]).astype(jnp.float32)
        b1f = b1.reshape(1, hid).astype(jnp.float32)
    s2, b2 = bn_fold(*params["bn2"])
    wdwf = (params["w_dw"] * s2[None, None, :]).reshape(9, 1, hid).astype(jnp.float32)
    b2f = b2.reshape(1, hid).astype(jnp.float32)
    s3, b3 = bn_fold(*params["bn3"])
    w3f = (params["w3"] * s3[None, :]).astype(jnp.float32)
    b3f = b3.reshape(1, out_ch).astype(jnp.float32)

    th = _pick_row_tile(ho, wo, wp_pad, hid, stride)
    tn = ho // th
    rin = (th - 1) * stride + 3

    kernel = _make_fused_kernel(expand=expand, shortcut=shortcut, stride=stride,
                                th=th, rin=rin, h=h, w=w, wp_pad=wp_pad,
                                wo=wo, chid=hid)

    in_specs = [pl.BlockSpec((1, hp, wp_pad, in_ch), lambda ni, ti: (ni, 0, 0, 0))]
    args = [xpad]
    if expand:
        in_specs += [pl.BlockSpec((in_ch, hid), lambda ni, ti: (0, 0)),
                     pl.BlockSpec((1, hid), lambda ni, ti: (0, 0))]
        args += [w1f, b1f]
    in_specs += [pl.BlockSpec((9, 1, hid), lambda ni, ti: (0, 0, 0)),
                 pl.BlockSpec((1, hid), lambda ni, ti: (0, 0)),
                 pl.BlockSpec((hid, out_ch), lambda ni, ti: (0, 0)),
                 pl.BlockSpec((1, out_ch), lambda ni, ti: (0, 0))]
    args += [wdwf, b2f, w3f, b3f]
    if shortcut:
        in_specs.append(pl.BlockSpec((th * wo, in_ch),
                                     lambda ni, ti: (ni * tn + ti, 0)))
        args.append(x.reshape(n * h * w, in_ch))

    out_flat = pl.pallas_call(
        kernel,
        out_shape=jax.ShapeDtypeStruct((n * ho * wo, out_ch), jnp.float32),
        grid=(n, tn),
        in_specs=in_specs,
        out_specs=pl.BlockSpec((th * wo, out_ch), lambda ni, ti: (ni * tn + ti, 0)),
        scratch_shapes=[pltpu.VMEM((rin, wp_pad, hid), jnp.float32)],
        compiler_params=pltpu.CompilerParams(
            dimension_semantics=("parallel", "parallel"),
            vmem_limit_bytes=48 * 1024 * 1024),
    )(*args)

    out = out_flat.reshape(n, ho, wo, out_ch)
    return jnp.transpose(out, (0, 3, 1, 2))                       # back to NCHW


# --------------------------- params & reference ------------------------------

def _bn_params(key, c):
    k1, k2, k3, k4 = jax.random.split(key, 4)
    gamma = jax.random.uniform(k1, (c,), minval=0.5, maxval=1.5)
    beta = jax.random.normal(k2, (c,)) * 0.1
    mean = jax.random.normal(k3, (c,)) * 0.1
    var = jax.random.uniform(k4, (c,), minval=0.5, maxval=1.5)
    return (gamma, beta, mean, var)


def init_params(key, in_ch, out_ch, expand_ratio):
    hidden = in_ch * expand_ratio
    ks = jax.random.split(key, 6)
    params = {}
    if expand_ratio != 1:
        params["w1"] = jax.random.normal(ks[0], (in_ch, hidden), jnp.float32) * 0.1
        params["bn1"] = _bn_params(ks[1], hidden)
    params["w_dw"] = jax.random.normal(ks[2], (3, 3, hidden), jnp.float32) * 0.1
    params["bn2"] = _bn_params(ks[3], hidden)
    params["w3"] = jax.random.normal(ks[4], (hidden, out_ch), jnp.float32) * 0.1
    params["bn3"] = _bn_params(ks[5], out_ch)
    return params


def reference_forward(x_nchw, params, in_ch, out_ch, stride, expand_ratio):
    """Pure-JAX reference (lax.conv for depthwise) for correctness checking."""
    x = jnp.transpose(x_nchw, (0, 2, 3, 1)).astype(jnp.float32)
    hidden = in_ch * expand_ratio
    if expand_ratio != 1:
        s1, b1 = bn_fold(*params["bn1"])
        h1 = jnp.clip(jnp.einsum("nhwc,cd->nhwd", x, params["w1"]) * s1 + b1, 0.0, 6.0)
    else:
        h1 = x
    s2, b2 = bn_fold(*params["bn2"])
    w_hwio = params["w_dw"].reshape(3, 3, 1, hidden)
    dw = lax.conv_general_dilated(
        h1, w_hwio, (stride, stride), ((1, 1), (1, 1)),
        dimension_numbers=("NHWC", "HWIO", "NHWC"), feature_group_count=hidden)
    h2 = jnp.clip(dw * s2 + b2, 0.0, 6.0)
    s3, b3 = bn_fold(*params["bn3"])
    out = jnp.einsum("nhwc,cd->nhwd", h2, params["w3"]) * s3 + b3
    if stride == 1 and in_ch == out_ch:
        out = out + x
    return jnp.transpose(out, (0, 3, 1, 2))


# ---------------------------------- main -------------------------------------

if __name__ == "__main__":
    key = jax.random.PRNGKey(0)

    # (in_ch, out_ch, stride, expand_ratio, batch, H, W)
    cases = [
        (4, 4, 1, 6, 2, 16, 16),    # expand + residual shortcut, stride 1
        (4, 8, 2, 1, 2, 16, 16),    # no expand conv, stride 2, no shortcut
        (16, 24, 2, 6, 2, 16, 16),  # expand (hidden=96), stride 2
        (32, 32, 1, 4, 2, 8, 8),    # expand (hidden=128, full lane) + shortcut
    ]

    for (cin, cout, s, e, n, hsp, wsp) in cases:
        key, kx, kp = jax.random.split(key, 3)
        x = jax.random.normal(kx, (n, cin, hsp, wsp), dtype=jnp.float32)
        params = init_params(kp, cin, cout, e)

        out = inverted_residual_forward(x, params, cin, cout, s, e)
        out = jax.block_until_ready(out)

        ho = (hsp - 1) // s + 1
        wo = (wsp - 1) // s + 1
        assert out.shape == (n, cout, ho, wo)

        ref = reference_forward(x, params, cin, cout, s, e)
        np.testing.assert_allclose(np.asarray(out), np.asarray(ref),
                                   rtol=2e-4, atol=2e-4)

    print("KERNEL_OK")
</pallas_src>

<mosaic_0001>
module attributes {stable_mosaic.version = 11 : i64} {
  func.func @kernel(%arg0: i32, %arg1: i32, %arg2: memref<1x18x24x4xf32, #tpu.memory_space<vmem>>, %arg3: memref<4x24xf32, #tpu.memory_space<vmem>>, %arg4: memref<1x24xf32, #tpu.memory_space<vmem>>, %arg5: memref<9x1x24xf32, #tpu.memory_space<vmem>>, %arg6: memref<1x24xf32, #tpu.memory_space<vmem>>, %arg7: memref<24x4xf32, #tpu.memory_space<vmem>>, %arg8: memref<1x4xf32, #tpu.memory_space<vmem>>, %arg9: memref<256x4xf32, #tpu.memory_space<vmem>>, %arg10: memref<256x4xf32, #tpu.memory_space<vmem>>, %arg11: memref<18x24x24xf32, #tpu.memory_space<vmem>>) attributes {dimension_semantics = [#tpu.dimension_semantics<parallel>, #tpu.dimension_semantics<parallel>], iteration_bounds = array<i64: 2, 1>, scalar_prefetch = 0 : i64, scratch_operands = 1 : i64, tpu.core_type = #tpu.core_type<tc>, window_params = [{transform_indices = @transform_0, window_bounds = array<i64: 1, 18, 24, 4>}, {pipeline_mode = #tpu.pipeline_mode<synchronous>, transform_indices = @transform_1, window_bounds = array<i64: 4, 24>}, {pipeline_mode = #tpu.pipeline_mode<synchronous>, transform_indices = @transform_2, window_bounds = array<i64: 1, 24>}, {pipeline_mode = #tpu.pipeline_mode<synchronous>, transform_indices = @transform_3, window_bounds = array<i64: 9, 1, 24>}, {pipeline_mode = #tpu.pipeline_mode<synchronous>, transform_indices = @transform_4, window_bounds = array<i64: 1, 24>}, {pipeline_mode = #tpu.pipeline_mode<synchronous>, transform_indices = @transform_5, window_bounds = array<i64: 24, 4>}, {pipeline_mode = #tpu.pipeline_mode<synchronous>, transform_indices = @transform_6, window_bounds = array<i64: 1, 4>}, {transform_indices = @transform_7, window_bounds = array<i64: 256, 4>}, {transform_indices = @transform_8, window_bounds = array<i64: 256, 4>}]} {
    %c16_i32 = arith.constant 16 : i32
    %0 = arith.muli %arg1, %c16_i32 : i32
    %1 = tpu.assume_multiple %0, 16 : i32
    %c0 = arith.constant 0 : index
    %2 = arith.index_cast %1 : i32 to index
    %c0_0 = arith.constant 0 : index
    %c0_1 = arith.constant 0 : index
    %3 = vector.load %arg2[%c0, %2, %c0_0, %c0_1] : memref<1x18x24x4xf32, #tpu.memory_space<vmem>>, vector<1x18x24x4xf32>
    %4 = vector.shape_cast %3 : vector<1x18x24x4xf32> to vector<18x24x4xf32>
    %5 = vector.shape_cast %4 : vector<18x24x4xf32> to vector<432x4xf32>
    %c0_2 = arith.constant 0 : index
    %c0_3 = arith.constant 0 : index
    %6 = vector.load %arg3[%c0_2, %c0_3] : memref<4x24xf32, #tpu.memory_space<vmem>>, vector<4x24xf32>
    %cst = arith.constant dense<0.000000e+00> : vector<432x24xf32>
    %7 = tpu.matmul %5, %6, %cst {dimension_numbers = #tpu.dot_dimension_numbers<[1], [0], [0], [1], [0, 0, 1, 1], [], []>} : vector<432x4xf32>, vector<4x24xf32>, vector<432x24xf32> -> vector<432x24xf32>
    %c0_4 = arith.constant 0 : index
    %c0_5 = arith.constant 0 : index
    %8 = vector.load %arg4[%c0_4, %c0_5] : memref<1x24xf32, #tpu.memory_space<vmem>>, vector<1x24xf32>
    %9 = vector.broadcast %8 : vector<1x24xf32> to vector<432x24xf32>
    %10 = arith.addf %7, %9 : vector<432x24xf32>
    %cst_6 = arith.constant 0.000000e+00 : f32
    %cst_7 = arith.constant 6.000000e+00 : f32
    %11 = vector.broadcast %cst_6 : f32 to vector<432x24xf32>
    %12 = arith.maximumf %11, %10 : vector<432x24xf32>
    %13 = vector.broadcast %cst_7 : f32 to vector<432x24xf32>
    %14 = arith.minimumf %13, %12 : vector<432x24xf32>
    %15 = vector.shape_cast %14 : vector<432x24xf32> to vector<18x24x24xf32>
    %16 = tpu.iota {dimensions = array<i32: 0>} : vector<18x24x1xi32>
    %17 = vector.broadcast %1 : i32 to vector<18x24x1xi32>
    %18 = arith.addi %17, %16 : vector<18x24x1xi32>
    %19 = tpu.iota {dimensions = array<i32: 1>} : vector<18x24x1xi32>
    %c1_i32 = arith.constant 1 : i32
    %20 = vector.broadcast %c1_i32 : i32 to vector<18x24x1xi32>
    %21 = arith.cmpi sge, %18, %20 : vector<18x24x1xi32>
    %c16_i32_8 = arith.constant 16 : i32
    %22 = vector.broadcast %c16_i32_8 : i32 to vector<18x24x1xi32>
    %23 = arith.cmpi sle, %18, %22 : vector<18x24x1xi32>
    %24 = arith.andi %21, %23 : vector<18x24x1xi1>
    %c1_i32_9 = arith.constant 1 : i32
    %25 = vector.broadcast %c1_i32_9 : i32 to vector<18x24x1xi32>
    %26 = arith.cmpi sge, %19, %25 : vector<18x24x1xi32>
    %27 = arith.andi %24, %26 : vector<18x24x1xi1>
    %c16_i32_10 = arith.constant 16 : i32
    %28 = vector.broadcast %c16_i32_10 : i32 to vector<18x24x1xi32>
    %29 = arith.cmpi sle, %19, %28 : vector<18x24x1xi32>
    %30 = arith.andi %27, %29 : vector<18x24x1xi1>
    %cst_11 = arith.constant 0.000000e+00 : f32
    %31 = vector.shape_cast %30 : vector<18x24x1xi1> to vector<18x24x1xi1>
    %32 = vector.broadcast %31 : vector<18x24x1xi1> to vector<18x24x24xi1>
    %33 = vector.broadcast %cst_11 : f32 to vector<18x24x24xf32>
    %34 = arith.select %32, %15, %33 : vector<18x24x24xi1>, vector<18x24x24xf32>
    %c0_12 = arith.constant 0 : index
    %c0_13 = arith.constant 0 : index
    %c0_14 = arith.constant 0 : index
    %35 = vector.load %arg11[%c0_12, %c0_13, %c0_14] : memref<18x24x24xf32, #tpu.memory_space<vmem>>, vector<18x24x24xf32>
    tpu.vector_store %arg11[%c0_12, %c0_13, %c0_14], %34 {strides = array<i32>} : memref<18x24x24xf32, #tpu.memory_space<vmem>>, vector<18x24x24xf32>,
    %c0_15 = arith.constant 0 : index
    %c0_16 = arith.constant 0 : index
    %c0_17 = arith.constant 0 : index
    %36 = vector.load %arg11[%c0_15, %c0_16, %c0_17] : memref<18x24x24xf32, #tpu.memory_space<vmem>>, vector<16x16x24xf32>
    %c0_18 = arith.constant 0 : index
    %c0_19 = arith.constant 0 : index
    %c0_20 = arith.constant 0 : index
    %37 = vector.load %arg5[%c0_18, %c0_19, %c0_20] : memref<9x1x24xf32, #tpu.memory_space<vmem>>, vector<1x1x24xf32>
    %38 = vector.shape_cast %37 : vector<1x1x24xf32> to vector<1x24xf32>
    %39 = vector.shape_cast %38 : vector<1x24xf32> to vector<1x1x24xf32>
    %40 = vector.broadcast %39 : vector<1x1x24xf32> to vector<16x16x24xf32>
    %41 = arith.mulf %36, %40 : vector<16x16x24xf32>
    %c0_21 = arith.constant 0 : index
    %c1 = arith.constant 1 : index
    %c0_22 = arith.constant 0 : index
    %42 = vector.load %arg11[%c0_21, %c1, %c0_22] : memref<18x24x24xf32, #tpu.memory_space<vmem>>, vector<16x16x24xf32>
    %c1_23 = arith.constant 1 : index
    %c0_24 = arith.constant 0 : index
    %c0_25 = arith.constant 0 : index
    %43 = vector.load %arg5[%c1_23, %c0_24, %c0_25] : memref<9x1x24xf32, #tpu.memory_space<vmem>>, vector<1x1x24xf32>
    %44 = vector.shape_cast %43 : vector<1x1x24xf32> to vector<1x24xf32>
    %45 = vector.shape_cast %44 : vector<1x24xf32> to vector<1x1x24xf32>
    %46 = vector.broadcast %45 : vector<1x1x24xf32> to vector<16x16x24xf32>
    %47 = arith.mulf %42, %46 : vector<16x16x24xf32>
    %c0_26 = arith.constant 0 : index
    %c2 = arith.constant 2 : index
    %c0_27 = arith.constant 0 : index
    %48 = vector.load %arg11[%c0_26, %c2, %c0_27] : memref<18x24x24xf32, #tpu.memory_space<vmem>>, vector<16x16x24xf32>
    %c2_28 = arith.constant 2 : index
    %c0_29 = arith.constant 0 : index
    %c0_30 = arith.constant 0 : index
    %49 = vector.load %arg5[%c2_28, %c0_29, %c0_30] : memref<9x1x24xf32, #tpu.memory_space<vmem>>, vector<1x1x24xf32>
    %50 = vector.shape_cast %49 : vector<1x1x24xf32> to vector<1x24xf32>
    %51 = vector.shape_cast %50 : vector<1x24xf32> to vector<1x1x24xf32>
    %52 = vector.broadcast %51 : vector<1x1x24xf32> to vector<16x16x24xf32>
    %53 = arith.mulf %48, %52 : vector<16x16x24xf32>
    %c1_31 = arith.constant 1 : index
    %c0_32 = arith.constant 0 : index
    %c0_33 = arith.constant 0 : index
    %54 = vector.load %arg11[%c1_31, %c0_32, %c0_33] : memref<18x24x24xf32, #tpu.memory_space<vmem>>, vector<16x16x24xf32>
    %c3 = arith.constant 3 : index
    %c0_34 = arith.constant 0 : index
    %c0_35 = arith.constant 0 : index
    %55 = vector.load %arg5[%c3, %c0_34, %c0_35] : memref<9x1x24xf32, #tpu.memory_space<vmem>>, vector<1x1x24xf32>
    %56 = vector.shape_cast %55 : vector<1x1x24xf32> to vector<1x24xf32>
    %57 = vector.shape_cast %56 : vector<1x24xf32> to vector<1x1x24xf32>
    %58 = vector.broadcast %57 : vector<1x1x24xf32> to vector<16x16x24xf32>
    %59 = arith.mulf %54, %58 : vector<16x16x24xf32>
    %c1_36 = arith.constant 1 : index
    %c1_37 = arith.constant 1 : index
    %c0_38 = arith.constant 0 : index
    %60 = vector.load %arg11[%c1_36, %c1_37, %c0_38] : memref<18x24x24xf32, #tpu.memory_space<vmem>>, vector<16x16x24xf32>
    %c4 = arith.constant 4 : index
    %c0_39 = arith.constant 0 : index
    %c0_40 = arith.constant 0 : index
    %61 = vector.load %arg5[%c4, %c0_39, %c0_40] : memref<9x1x24xf32, #tpu.memory_space<vmem>>, vector<1x1x24xf32>
    %62 = vector.shape_cast %61 : vector<1x1x24xf32> to vector<1x24xf32>
    %63 = vector.shape_cast %62 : vector<1x24xf32> to vector<1x1x24xf32>
    %64 = vector.broadcast %63 : vector<1x1x24xf32> to vector<16x16x24xf32>
    %65 = arith.mulf %60, %64 : vector<16x16x24xf32>
    %c1_41 = arith.constant 1 : index
    %c2_42 = arith.constant 2 : index
    %c0_43 = arith.constant 0 : index
    %66 = vector.load %arg11[%c1_41, %c2_42, %c0_43] : memref<18x24x24xf32, #tpu.memory_space<vmem>>, vector<16x16x24xf32>
    %c5 = arith.constant 5 : index
    %c0_44 = arith.constant 0 : index
    %c0_45 = arith.constant 0 : index
    %67 = vector.load %arg5[%c5, %c0_44, %c0_45] : memref<9x1x24xf32, #tpu.memory_space<vmem>>, vector<1x1x24xf32>
    %68 = vector.shape_cast %67 : vector<1x1x24xf32> to vector<1x24xf32>
    %69 = vector.shape_cast %68 : vector<1x24xf32> to vector<1x1x24xf32>
    %70 = vector.broadcast %69 : vector<1x1x24xf32> to vector<16x16x24xf32>
    %71 = arith.mulf %66, %70 : vector<16x16x24xf32>
    %c2_46 = arith.constant 2 : index
    %c0_47 = arith.constant 0 : index
    %c0_48 = arith.constant 0 : index
    %72 = vector.load %arg11[%c2_46, %c0_47, %c0_48] : memref<18x24x24xf32, #tpu.memory_space<vmem>>, vector<16x16x24xf32>
    %c6 = arith.constant 6 : index
    %c0_49 = arith.constant 0 : index
    %c0_50 = arith.constant 0 : index
    %73 = vector.load %arg5[%c6, %c0_49, %c0_50] : memref<9x1x24xf32, #tpu.memory_space<vmem>>, vector<1x1x24xf32>
    %74 = vector.shape_cast %73 : vector<1x1x24xf32> to vector<1x24xf32>
    %75 = vector.shape_cast %74 : vector<1x24xf32> to vector<1x1x24xf32>
    %76 = vector.broadcast %75 : vector<1x1x24xf32> to vector<16x16x24xf32>
    %77 = arith.mulf %72, %76 : vector<16x16x24xf32>
    %c2_51 = arith.constant 2 : index
    %c1_52 = arith.constant 1 : index
    %c0_53 = arith.constant 0 : index
    %78 = vector.load %arg11[%c2_51, %c1_52, %c0_53] : memref<18x24x24xf32, #tpu.memory_space<vmem>>, vector<16x16x24xf32>
    %c7 = arith.constant 7 : index
    %c0_54 = arith.constant 0 : index
    %c0_55 = arith.constant 0 : index
    %79 = vector.load %arg5[%c7, %c0_54, %c0_55] : memref<9x1x24xf32, #tpu.memory_space<vmem>>, vector<1x1x24xf32>
    %80 = vector.shape_cast %79 : vector<1x1x24xf32> to vector<1x24xf32>
    %81 = vector.shape_cast %80 : vector<1x24xf32> to vector<1x1x24xf32>
    %82 = vector.broadcast %81 : vector<1x1x24xf32> to vector<16x16x24xf32>
    %83 = arith.mulf %78, %82 : vector<16x16x24xf32>
    %c2_56 = arith.constant 2 : index
    %c2_57 = arith.constant 2 : index
    %c0_58 = arith.constant 0 : index
    %84 = vector.load %arg11[%c2_56, %c2_57, %c0_58] : memref<18x24x24xf32, #tpu.memory_space<vmem>>, vector<16x16x24xf32>
    %c8 = arith.constant 8 : index
    %c0_59 = arith.constant 0 : index
    %c0_60 = arith.constant 0 : index
    %85 = vector.load %arg5[%c8, %c0_59, %c0_60] : memref<9x1x24xf32, #tpu.memory_space<vmem>>, vector<1x1x24xf32>
    %86 = vector.shape_cast %85 : vector<1x1x24xf32> to vector<1x24xf32>
    %87 = vector.shape_cast %86 : vector<1x24xf32> to vector<1x1x24xf32>
    %88 = vector.broadcast %87 : vector<1x1x24xf32> to vector<16x16x24xf32>
    %89 = arith.mulf %84, %88 : vector<16x16x24xf32>
    %90 = arith.addf %41, %47 : vector<16x16x24xf32>
    %91 = arith.addf %53, %59 : vector<16x16x24xf32>
    %92 = arith.addf %65, %71 : vector<16x16x24xf32>
    %93 = arith.addf %77, %83 : vector<16x16x24xf32>
    %94 = arith.addf %90, %91 : vector<16x16x24xf32>
    %95 = arith.addf %92, %93 : vector<16x16x24xf32>
    %96 = arith.addf %94, %95 : vector<16x16x24xf32>
    %97 = arith.addf %96, %89 : vector<16x16x24xf32>
    %c0_61 = arith.constant 0 : index
    %c0_62 = arith.constant 0 : index
    %98 = vector.load %arg6[%c0_61, %c0_62] : memref<1x24xf32, #tpu.memory_space<vmem>>, vector<1x24xf32>
    %99 = vector.shape_cast %98 : vector<1x24xf32> to vector<1x1x24xf32>
    %100 = vector.broadcast %99 : vector<1x1x24xf32> to vector<16x16x24xf32>
    %101 = arith.addf %97, %100 : vector<16x16x24xf32>
    %cst_63 = arith.constant 0.000000e+00 : f32
    %cst_64 = arith.constant 6.000000e+00 : f32
    %102 = vector.broadcast %cst_63 : f32 to vector<16x16x24xf32>
    %103 = arith.maximumf %102, %101 : vector<16x16x24xf32>
    %104 = vector.broadcast %cst_64 : f32 to vector<16x16x24xf32>
    %105 = arith.minimumf %104, %103 : vector<16x16x24xf32>
    %106 = vector.shape_cast %105 : vector<16x16x24xf32> to vector<256x24xf32>
    %c0_65 = arith.constant 0 : index
    %c0_66 = arith.constant 0 : index
    %107 = vector.load %arg7[%c0_65, %c0_66] : memref<24x4xf32, #tpu.memory_space<vmem>>, vector<24x4xf32>
    %cst_67 = arith.constant dense<0.000000e+00> : vector<256x4xf32>
    %108 = tpu.matmul %106, %107, %cst_67 {dimension_numbers = #tpu.dot_dimension_numbers<[1], [0], [0], [1], [0, 0, 1, 1], [], []>} : vector<256x24xf32>, vector<24x4xf32>, vector<256x4xf32> -> vector<256x4xf32>
    %c0_68 = arith.constant 0 : index
    %c0_69 = arith.constant 0 : index
    %109 = vector.load %arg8[%c0_68, %c0_69] : memref<1x4xf32, #tpu.memory_space<vmem>>, vector<1x4xf32>
    %110 = vector.broadcast %109 : vector<1x4xf32> to vector<256x4xf32>
    %111 = arith.addf %108, %110 : vector<256x4xf32>
    %c0_70 = arith.constant 0 : index
    %c0_71 = arith.constant 0 : index
    %112 = vector.load %arg9[%c0_70, %c0_71] : memref<256x4xf32, #tpu.memory_space<vmem>>, vector<256x4xf32>
    %113 = arith.addf %111, %112 : vector<256x4xf32>
    %c0_72 = arith.constant 0 : index
    %c0_73 = arith.constant 0 : index
    %114 = vector.load %arg10[%c0_72, %c0_73] : memref<256x4xf32, #tpu.memory_space<vmem>>, vector<256x4xf32>
    tpu.vector_store %arg10[%c0_72, %c0_73], %113 {strides = array<i32>} : memref<256x4xf32, #tpu.memory_space<vmem>>, vector<256x4xf32>,
    return
  }
  func.func @transform_0(%arg0: i32, %arg1: i32) -> (i32, i32, i32, i32) {
    %c0_i32 = arith.constant 0 : i32
    %c0_i32_0 = arith.constant 0 : i32
    %c0_i32_1 = arith.constant 0 : i32
    %c0_i32_2 = arith.constant 0 : i32
    return %arg0, %c0_i32, %c0_i32_0, %c0_i32_1 : i32, i32, i32, i32
  }
  func.func @transform_1(%arg0: i32, %arg1: i32) -> (i32, i32) {
    %c0_i32 = arith.constant 0 : i32
    %c0_i32_0 = arith.constant 0 : i32
    %c0_i32_1 = arith.constant 0 : i32
    return %c0_i32, %c0_i32_0 : i32, i32
  }
  func.func @transform_2(%arg0: i32, %arg1: i32) -> (i32, i32) {
    %c0_i32 = arith.constant 0 : i32
    %c0_i32_0 = arith.constant 0 : i32
    %c0_i32_1 = arith.constant 0 : i32
    return %c0_i32, %c0_i32_0 : i32, i32
  }
  func.func @transform_3(%arg0: i32, %arg1: i32) -> (i32, i32, i32) {
    %c0_i32 = arith.constant 0 : i32
    %c0_i32_0 = arith.constant 0 : i32
    %c0_i32_1 = arith.constant 0 : i32
    %c0_i32_2 = arith.constant 0 : i32
    return %c0_i32, %c0_i32_0, %c0_i32_1 : i32, i32, i32
  }
  func.func @transform_4(%arg0: i32, %arg1: i32) -> (i32, i32) {
    %c0_i32 = arith.constant 0 : i32
    %c0_i32_0 = arith.constant 0 : i32
    %c0_i32_1 = arith.constant 0 : i32
    return %c0_i32, %c0_i32_0 : i32, i32
  }
  func.func @transform_5(%arg0: i32, %arg1: i32) -> (i32, i32) {
    %c0_i32 = arith.constant 0 : i32
    %c0_i32_0 = arith.constant 0 : i32
    %c0_i32_1 = arith.constant 0 : i32
    return %c0_i32, %c0_i32_0 : i32, i32
  }
  func.func @transform_6(%arg0: i32, %arg1: i32) -> (i32, i32) {
    %c0_i32 = arith.constant 0 : i32
    %c0_i32_0 = arith.constant 0 : i32
    %c0_i32_1 = arith.constant 0 : i32
    return %c0_i32, %c0_i32_0 : i32, i32
  }
  func.func @transform_7(%arg0: i32, %arg1: i32) -> (i32, i32) {
    %c1_i32 = arith.constant 1 : i32
    %0 = arith.muli %arg0, %c1_i32 : i32
    %1 = arith.addi %0, %arg1 : i32
    %c0_i32 = arith.constant 0 : i32
    %c0_i32_0 = arith.constant 0 : i32
    return %1, %c0_i32 : i32, i32
  }
  func.func @transform_8(%arg0: i32, %arg1: i32) -> (i32, i32) {
    %c1_i32 = arith.constant 1 : i32
    %0 = arith.muli %arg0, %c1_i32 : i32
    %1 = arith.addi %0, %arg1 : i32
    %c0_i32 = arith.constant 0 : i32
    %c0_i32_0 = arith.constant 0 : i32
    return %1, %c0_i32 : i32, i32
  }
}

</mosaic_0001>

<bundles_post_ra>
// kernel: tpu_custom_call.1
= control target key start
LH: loop header
LB: loop body
LE: loop exit
PB: predicated region body
PF: predicated region fallthrough
CT: control target
= control target key end

     0   :  { %s3411_s27 = smov 0   ;;  %s3413_s28 = smov 0   ;;  %s4828_s0 = inlined_call_operand.vmem [shape: f32[2,18,24,4], index: 0, kind: input, shape index: {}]   ;;  %s4829_s1 = inlined_call_operand.vmem [shape: f32[4,24], index: 1, kind: input, shape index: {}]   ;;  %s4830_s2 = inlined_call_operand.vmem [shape: f32[1,24], index: 2, kind: input, shape index: {}]   ;;  %s4831_s3 = inlined_call_operand.vmem [shape: f32[9,1,24], index: 3, kind: input, shape index: {}]   ;;  %s4832_s4 = inlined_call_operand.vmem [shape: f32[1,24], index: 4, kind: input, shape index: {}]   ;;  %s4833_s5 = inlined_call_operand.vmem [shape: f32[24,4], index: 5, kind: input, shape index: {}]   ;;  %s4834_s6 = inlined_call_operand.vmem [shape: f32[1,4], index: 6, kind: input, shape index: {}]   ;;  %s4835_s7 = inlined_call_operand.vmem [shape: f32[512,4], index: 7, kind: input, shape index: {}]   ;;  %s4836_s8 = inlined_call_operand.vmem [shape: f32[512,4], index: 8, kind: output, shape index: {}]  }
   0x1   :  { %s3415_s29 = smov 0  }
   0x2 LB: > { %s30_s30 = sadd.s32 1, %s3359_s28  ;;  %p2956_p0 = scmp.ge.s32.totalorder %s3363_s29, 1  ;;  %s3363_s29 = sphi %s3415_s29, %s18_s29   ;;  %s3359_s28 = sphi %s3413_s28, %s4838_s28   ;;  %s3355_s27 = sphi %s3411_s27, %s4837_s27  }
   0x3   : > { %p32_p1 = scmp.ge.s32.totalorder %s30_s30, 2  ;;  %p291_p2 = scmp.lt.s32.totalorder %s3363_s29, 3 }
   0x5   : > { %s4840_s30 = smov (%p32_p1, %s30_s30), 0  ;;  %p292_p3 = pnand %p2956_p0, %p291_p2 }
   0x6   : > { %v410_v0 = vld [vmem:[%s4829_s1] sm:$0xf] (!%p292_p3)  ;;  %vm581_vm0 = vcmask (!%p292_p3), 1043456   ;;  %p332_p4 = scmp.lt.s32.totalorder (!%p292_p3), %s3355_s27, 1  ;;  %vm418_vm1 = vcmask (!%p292_p3), 31744   ;;  %vm1380_vm2 = vcmask (!%p292_p3), 195584   ;;  %v1046_v61 = vlaneseq (!%p292_p3) }
   0x7   : > { %295 = sbr.rel (%p292_p3) target bundleno = 676 (0x2a4), region = 52  ;;  %3161 = vmatprep.subr.msk.mxu0 (!%p292_p3), %vm581_vm0, %v410_v0  ;;  %3302 = vmatprep.subr.msk.mxu1 (!%p292_p3), %vm581_vm0, %v410_v0  ;;  %v3365_v53 = vmov (!%p292_p3), 0.0   ;;  %v2443_v54 = vld [vmem:[%s4833_s5] sm:$0xff] (!%p292_p3)  ;;  %v2444_v55 = vld [vmem:[%s4833_s5 + $0x8] sm:$0xff] (!%p292_p3)  ;;  %v2445_v59 = vld [vmem:[%s4833_s5 + $0x10] sm:$0xff] (!%p292_p3) }
   0x8   : > { %3162 = vmatpush3.msk.msra.mxu0 (!%p292_p3), %vm581_vm0, %v410_v0  ;;  %3303 = vmatpush3.msk.msra.mxu1 (!%p292_p3), %vm581_vm0, %v410_v0  ;;  %1381 = vst.msk [vmem:[#allocation2] sm:$0xff] (!%p292_p3), %vm1380_vm2, %v3365_v53  ;;  %1382 = vst.msk [vmem:[#allocation2 + $0x8] sm:$0xff] (!%p292_p3), %vm1380_vm2, %v3365_v53  ;;  %v3298_v56 = vpack.c.bf16 (!%p292_p3), %v2444_v55, %v2443_v54  ;;  %v3567_v63 = vld [vmem:[%s4830_s2] ss:$0 sm:$0xff] (!%p292_p3) }
   0x9   : > { %1383 = vst.msk [vmem:[#allocation2 + $0x10] sm:$0xff] (!%p292_p3), %vm1380_vm2, %v3365_v53  ;;  %1432 = vst.msk [vmem:[#allocation2 + $0x198] sm:$0xff] (!%p292_p3), %vm1380_vm2, %v3365_v53 }
   0xa   : > { %1433 = vst.msk [vmem:[#allocation2 + $0x1a0] sm:$0xff] (!%p292_p3), %vm1380_vm2, %v3365_v53  ;;  %1434 = vst.msk [vmem:[#allocation2 + $0x1a8] sm:$0xff] (!%p292_p3), %vm1380_vm2, %v3365_v53  ;;  %3299 = vmatprep.subr.bf16.mxu1 (!%p292_p3), %v3298_v56 }
   0xe   : > { %s333_s11 = scalar_select %p332_p4, %s3355_s27, 1 }
  0x10   : > { %s3304_s12 = smul.u32 432, %s333_s11 }
  0x12   : > { %s3439_s15 = scalar_lea.vmem %s4828_s0, %s3304_s12  ;;  %s2958_s12 = sshll.u32 %s3355_s27, 5 }
  0x13   : > { %v356_v1 = vld [vmem:[%s3439_s15] sm:$0xff]  ;;  %v357_v2 = vld [vmem:[%s3439_s15 + $0x8] sm:$0xff]  ;;  %v358_v3 = vld [vmem:[%s3439_s15 + $0x10] sm:$0xff]  ;;  %p339_p5 = scmp.lt.s32.totalorder %s2958_s12, 63 }
  0x14   : > { %3163 = vmatprep.mubr.msk.f32.mxu0 %vm418_vm1, %v356_v1  ;;  %v359_v4 = vld [vmem:[%s3439_s15 + $0x18] sm:$0xff]  ;;  %v360_v5 = vld [vmem:[%s3439_s15 + $0x20] sm:$0xff]  ;;  %v361_v6 = vld [vmem:[%s3439_s15 + $0x28] sm:$0xff]  ;;  %v3569_v1 = vshrl.u32 %v1046_v61, 7 }
  0x15   : > { %3164 = vmatmul.mubr.msk.f32.vlgmr.msra.gmra.mrb[0].mxu0 %vm418_vm1, %v357_v2  ;;  %v362_v7 = vld [vmem:[%s3439_s15 + $0x30] sm:$0xff]  ;;  %v363_v8 = vld [vmem:[%s3439_s15 + $0x38] sm:$0xff]  ;;  %v364_v9 = vld [vmem:[%s3439_s15 + $0x40] sm:$0xff]  ;;  %s4842_s12 = smov (!%p339_p5, %s2958_s12), 63 }
  0x16   : > { %3166 = vmatprep.mubr.msk.f32.mxu0 %vm418_vm1, %v358_v3  ;;  %v400_v10 = vld [vmem:[%s3439_s15 + $0x160] sm:$0xff]  ;;  %v401_v11 = vld [vmem:[%s3439_s15 + $0x168] sm:$0xff]  ;;  %v402_v12 = vld [vmem:[%s3439_s15 + $0x170] sm:$0xff]  ;;  %vm1104_vm3 = vcmp.ge.s32.totalorder %v3569_v1, 1  ;;  %s2959_s13 = sshll.u32 %s4842_s12, 3 }
  0x17   : > { %3229 = vmatprep.mubr.msk.f32.mxu1 %vm418_vm1, %v400_v10  ;;  %v365_v13 = vld [vmem:[%s3439_s15 + $0x48] sm:$0xff]  ;;  %v403_v14 = vld [vmem:[%s3439_s15 + $0x178] sm:$0xff]  ;;  %v366_v15 = vld [vmem:[%s3439_s15 + $0x50] sm:$0xff]  ;;  %s4679_s16 = scalar_lea.vmem %s4835_s7, %s2959_s13  ;;  %s4692_s20 = scalar_lea.vmem %s4836_s8, %s2959_s13 }
  0x18   : > { %3230 = vmatmul.mubr.msk.f32.vlgmr.msra.gmra.mrb[0].mxu1 %vm418_vm1, %v401_v11  ;;  %v404_v16 = vld [vmem:[%s3439_s15 + $0x180] sm:$0xff]  ;;  %v367_v17 = vld [vmem:[%s3439_s15 + $0x58] sm:$0xff]  ;;  %v405_v18 = vld [vmem:[%s3439_s15 + $0x188] sm:$0xff] }
  0x19   : > { %3167 = vmatmul.mubr.msk.f32.gmra.mrb[2].mxu0 %vm418_vm1, %v359_v4  ;;  %3232 = vmatprep.mubr.msk.f32.mxu1 %vm418_vm1, %v402_v12  ;;  %v368_v19 = vld [vmem:[%s3439_s15 + $0x60] sm:$0xff]  ;;  %v406_v20 = vld [vmem:[%s3439_s15 + $0x190] sm:$0xff]  ;;  %v369_v21 = vld [vmem:[%s3439_s15 + $0x68] sm:$0xff] }
  0x1a   : > { %3169 = vmatprep.mubr.msk.f32.mxu0 %vm418_vm1, %v360_v5  ;;  %v407_v22 = vld [vmem:[%s3439_s15 + $0x198] sm:$0xff]  ;;  %v370_v23 = vld [vmem:[%s3439_s15 + $0x70] sm:$0xff]  ;;  %v372_v25 = vld [vmem:[%s3439_s15 + $0x80] sm:$0xff]  ;;  %3301 = vmatpush3.bf16.msra.mxu1 %v3298_v56 }
  0x1b   : > { %v371_v24 = vld [vmem:[%s3439_s15 + $0x78] sm:$0xff]  ;;  %v373_v26 = vld [vmem:[%s3439_s15 + $0x88] sm:$0xff]  ;;  %v374_v27 = vld [vmem:[%s3439_s15 + $0x90] sm:$0xff]  ;;  %3248 = vmatprep.subr.mxu1 %v2445_v59 }
  0x1c   : > { %3233 = vmatmul.mubr.msk.f32.gmra.mrb[2].mxu1 %vm418_vm1, %v403_v14  ;;  %v375_v28 = vld [vmem:[%s3439_s15 + $0x98] sm:$0xff]  ;;  %v376_v29 = vld [vmem:[%s3439_s15 + $0xa0] sm:$0xff]  ;;  %v377_v30 = vld [vmem:[%s3439_s15 + $0xa8] sm:$0xff] }
  0x1d   : > { %3170 = vmatmul.mubr.msk.f32.gmra.mrb[4].mxu0 %vm418_vm1, %v361_v6  ;;  %3235 = vmatprep.mubr.msk.f32.mxu1 %vm418_vm1, %v404_v16  ;;  %v378_v31 = vld [vmem:[%s3439_s15 + $0xb0] sm:$0xff]  ;;  %v379_v32 = vld [vmem:[%s3439_s15 + $0xb8] sm:$0xff]  ;;  %v380_v33 = vld [vmem:[%s3439_s15 + $0xc0] sm:$0xff]  ;;  %v3574_v6 = vadd.s32 16, %v3569_v1 }
  0x1e   : > { %3172 = vmatprep.mubr.msk.f32.mxu0 %vm418_vm1, %v362_v7  ;;  %v381_v34 = vld [vmem:[%s3439_s15 + $0xc8] sm:$0xff]  ;;  %v382_v35 = vld [vmem:[%s3439_s15 + $0xd0] sm:$0xff]  ;;  %v383_v36 = vld [vmem:[%s3439_s15 + $0xd8] sm:$0xff]  ;;  %3249 = vmatpush3.msra.mxu1 %v2445_v59 }
  0x1f   : > { %v384_v37 = vld [vmem:[%s3439_s15 + $0xe0] sm:$0xff]  ;;  %v385_v38 = vld [vmem:[%s3439_s15 + $0xe8] sm:$0xff]  ;;  %v386_v39 = vld [vmem:[%s3439_s15 + $0xf0] sm:$0xff]  ;;  %vm1163_vm4 = vcmp.le.s32.totalorder %v3574_v6, 16 }
  0x20   : > { %3236 = vmatmul.mubr.msk.f32.gmra.mrb[4].mxu1 %vm418_vm1, %v405_v18  ;;  %v387_v40 = vld [vmem:[%s3439_s15 + $0xf8] sm:$0xff]  ;;  %v388_v41 = vld [vmem:[%s3439_s15 + $0x100] sm:$0xff]  ;;  %v389_v42 = vld [vmem:[%s3439_s15 + $0x108] sm:$0xff] }
  0x21   : > { %3173 = vmatmul.mubr.msk.f32.gmra.mrb[6].mxu0 %vm418_vm1, %v363_v8  ;;  %3238 = vmatprep.mubr.msk.f32.mxu1 %vm418_vm1, %v406_v20  ;;  %v390_v43 = vld [vmem:[%s3439_s15 + $0x110] sm:$0xff]  ;;  %v391_v44 = vld [vmem:[%s3439_s15 + $0x118] sm:$0xff]  ;;  %v392_v45 = vld [vmem:[%s3439_s15 + $0x120] sm:$0xff] }
  0x22   : > { %3175 = vmatprep.mubr.msk.f32.mxu0 %vm418_vm1, %v364_v9  ;;  %v393_v46 = vld [vmem:[%s3439_s15 + $0x128] sm:$0xff]  ;;  %v394_v47 = vld [vmem:[%s3439_s15 + $0x130] sm:$0xff]  ;;  %v395_v48 = vld [vmem:[%s3439_s15 + $0x138] sm:$0xff] }
  0x23   : > { %v396_v49 = vld [vmem:[%s3439_s15 + $0x140] sm:$0xff]  ;;  %v397_v50 = vld [vmem:[%s3439_s15 + $0x148] sm:$0xff]  ;;  %v398_v51 = vld [vmem:[%s3439_s15 + $0x150] sm:$0xff] }
  0x24   : > { %3239 = vmatmul.mubr.msk.f32.gmra.mrb[6].mxu1 %vm418_vm1, %v407_v22  ;;  %v399_v52 = vld [vmem:[%s3439_s15 + $0x158] sm:$0xff]  ;;  %v408_v57 = vld [vmem:[%s3439_s15 + $0x1a0] sm:$0xff]  ;;  %v409_v58 = vld [vmem:[%s3439_s15 + $0x1a8] sm:$0xff] }
  0x25   : > { %3176 = vmatmul.mubr.msk.f32.gmra.mrb[8].mxu0 %vm418_vm1, %v365_v13  ;;  %3241 = vmatprep.mubr.msk.f32.mxu1 %vm418_vm1, %v408_v57  ;;  %v3579_v7 = vld [vmem:[%s4831_s3] ss:$0 sm:$0xff]  ;;  %v1506_v12 = vld [vmem:[#allocation2 + $0x1] sm:$0xff] }
  0x26   : > { %3178 = vmatprep.mubr.msk.f32.mxu0 %vm418_vm1, %v366_v15  ;;  %v1435_v11 = vld [vmem:[#allocation2] sm:$0xff] }
  0x27   : > { %v3585_v13 = vld [vmem:[%s4831_s3 + $0x1] ss:$0 sm:$0xff]  ;;  %v1578_v15 = vld [vmem:[#allocation2 + $0x2] sm:$0xff]  ;;  %v1474_v22 = vmul.f32 %v3579_v7, %v1435_v11 }
  0x28   : > { %3242 = vmatmul.mubr.msk.f32.gmra.mrb[8].mxu1 %vm418_vm1, %v409_v58  ;;  %v3591_v16 = vld [vmem:[%s4831_s3 + $0x2] ss:$0 sm:$0xff] }
  0x29   : > { %3179 = vmatmul.mubr.msk.f32.gmra.mrb[10].mxu0 %vm418_vm1, %v367_v17 }
  0x2a   : > { %3181 = vmatprep.mubr.msk.f32.mxu0 %vm418_vm1, %v368_v19  ;;  %v1436_v19 = vld [vmem:[#allocation2 + $0x8] sm:$0xff] }
  0x2d   : > { %3182 = vmatmul.mubr.msk.f32.gmra.mrb[12].mxu0 %vm418_vm1, %v369_v21 }
  0x2e   : > { %3184 = vmatprep.mubr.msk.f32.mxu0 %vm418_vm1, %v370_v23  ;;  %v1546_v23 = vmul.f32 %v3585_v13, %v1506_v12 }
  0x31   : > { %3185 = vmatmul.mubr.msk.f32.gmra.mrb[14].mxu0 %vm418_vm1, %v371_v24  ;;  %v1507_v24 = vld [vmem:[#allocation2 + $0x9] sm:$0xff] }
  0x32   : > { %3187 = vmatprep.mubr.msk.f32.mxu0 %vm418_vm1, %v372_v25 }
  0x35   : > { %3188 = vmatmul.mubr.msk.f32.gmra.mrb[16].mxu0 %vm418_vm1, %v373_v26 }
  0x36   : > { %3190 = vmatprep.mubr.msk.f32.mxu0 %vm418_vm1, %v374_v27 }
  0x39   : > { %3191 = vmatmul.mubr.msk.f32.gmra.mrb[18].mxu0 %vm418_vm1, %v375_v28 }
  0x3a   : > { %3193 = vmatprep.mubr.msk.f32.mxu0 %vm418_vm1, %v376_v29  ;;  %v1618_v29 = vmul.f32 %v3591_v16, %v1578_v15 }
  0x3d   : > { %3194 = vmatmul.mubr.msk.f32.gmra.mrb[20].mxu0 %vm418_vm1, %v377_v30  ;;  %v1579_v30 = vld [vmem:[#allocation2 + $0xa] sm:$0xff] }
  0x3e   : > { %3196 = vmatprep.mubr.msk.f32.mxu0 %vm418_vm1, %v378_v31 }
  0x41   : > { %3197 = vmatmul.mubr.msk.f32.gmra.mrb[22].mxu0 %vm418_vm1, %v379_v32 }
  0x42   : > { %3199 = vmatprep.mubr.msk.f32.mxu0 %vm418_vm1, %v380_v33 }
  0x45   : > { %3200 = vmatmul.mubr.msk.f32.gmra.mrb[24].mxu0 %vm418_vm1, %v381_v34 }
  0x46   : > { %3202 = vmatprep.mubr.msk.f32.mxu0 %vm418_vm1, %v382_v35  ;;  %v1475_v35 = vmul.f32 %v3579_v7, %v1436_v19 }
  0x49   : > { %3203 = vmatmul.mubr.msk.f32.gmra.mrb[26].mxu0 %vm418_vm1, %v383_v36 }
  0x4a   : > { %3205 = vmatprep.mubr.msk.f32.mxu0 %vm418_vm1, %v384_v37 }
  0x4d   : > { %3206 = vmatmul.mubr.msk.f32.gmra.mrb[28].mxu0 %vm418_vm1, %v385_v38 }
  0x4e   : > { %3208 = vmatprep.mubr.msk.f32.mxu0 %vm418_vm1, %v386_v39  ;;  %v1547_v39 = vmul.f32 %v3585_v13, %v1507_v24 }
  0x50   : > { %v3632_v61 = vadd.f32 %v1547_v39, %v1475_v35 }
  0x51   : > { %3209 = vmatmul.mubr.msk.f32.gmra.mrb[30].mxu0 %vm418_vm1, %v387_v40 }
  0x52   : > { %3211 = vmatprep.mubr.msk.f32.mxu0 %vm418_vm1, %v388_v41 }
  0x55   : > { %3212 = vmatmul.mubr.msk.f32.gmra.mrb[32].mxu0 %vm418_vm1, %v389_v42 }
  0x56   : > { %3214 = vmatprep.mubr.msk.f32.mxu0 %vm418_vm1, %v390_v43  ;;  %v3610_v43 = vadd.f32 %v1546_v23, %v1474_v22 }
  0x59   : > { %3215 = vmatmul.mubr.msk.f32.gmra.mrb[34].mxu0 %vm418_vm1, %v391_v44  ;;  %v3613_v44 = vmul.f32 %v3591_v16, %v1579_v30 }
  0x5a   : > { %3217 = vmatprep.mubr.msk.f32.mxu0 %vm418_vm1, %v392_v45 }
  0x5d   : > { %3218 = vmatmul.mubr.msk.f32.gmra.mrb[36].mxu0 %vm418_vm1, %v393_v46 }
  0x5e   : > { %3220 = vmatprep.mubr.msk.f32.mxu0 %vm418_vm1, %v394_v47 }
  0x61   : > { %3221 = vmatmul.mubr.msk.f32.gmra.mrb[38].mxu0 %vm418_vm1, %v395_v48 }
  0x62   : > { %3223 = vmatprep.mubr.msk.f32.mxu0 %vm418_vm1, %v396_v49 }
  0x65   : > { %3224 = vmatmul.mubr.msk.f32.gmra.mrb[40].mxu0 %vm418_vm1, %v397_v50  ;;  %v3619_v50 = vld [vmem:[%s4831_s3 + $0x3] ss:$0 sm:$0xff] }
  0x66   : > { %3226 = vmatprep.mubr.msk.f32.mxu0 %vm418_vm1, %v398_v51 }
  0x69   : > { %3227 = vmatmul.mubr.msk.f32.gmra.mrb[42].mxu0 %vm418_vm1, %v399_v52 }
  0xe8   : > { %v3165_v60 = vpop.f32.mrb[0].mxu0 }
  0xe9   : > { %v651_v62 = vpop.f32.mrb[1].mxu0  ;;  %v3630_v60 = vld [vmem:[%s4831_s3 + $0x4] ss:$0 sm:$0xff] }
  0xeb   : > { %v3231_v25 = vpop.f32.mrb[0].mxu1 }
  0xec   : > { %v3168_v0 = vpop.f32.mrb[2].mxu0  ;;  %v877_v31 = vadd.f32 %v3231_v25, %v3567_v63  ;;  %v871_v32 = vpop.f32.mrb[1].mxu1 }
  0xed   : > { %v667_v2 = vadd.f32 %v3168_v0, %v3567_v63  ;;  %v661_v3 = vpop.f32.mrb[3].mxu0  ;;  %v872_v36 = vadd.f32 %v3567_v63, %v871_v32 }
  0xee   : > { %v965_v40 = vmax.f32 %v877_v31, 0.0 }
  0xef   : > { %v923_v4 = vmax.f32 %v667_v2, 0.0  ;;  %v964_v45 = vmax.f32 %v872_v36, 0.0  ;;  %v3234_v46 = vpop.f32.mrb[2].mxu1 }
  0xf0   : > { %v3171_v5 = vpop.f32.mrb[4].mxu0  ;;  %v1019_v51 = vmin.f32 %v965_v40, 6.0  ;;  %v887_v52 = vadd.f32 %v3234_v46, %v3567_v63  ;;  %v881_v53 = vpop.f32.mrb[3].mxu1 }
  0xf1   : > { %v977_v8 = vmin.f32 %v923_v4, 6.0  ;;  %v677_v9 = vadd.f32 %v3171_v5, %v3567_v63  ;;  %v671_v10 = vpop.f32.mrb[5].mxu0  ;;  %v1018_v56 = vmin.f32 %v964_v45, 6.0  ;;  %v3624_v57 = vadd.f32 %v3567_v63, %v881_v53 }
  0xf2   : > { %v672_v14 = vadd.f32 %v3567_v63, %v671_v10  ;;  %v1371_v62 = vsel %vm1104_vm3, %v1019_v51, 0.0  ;;  %v967_v0 = vmax.f32 %v887_v52, 0.0 }
  0xf3   : > { %v1329_v17 = vsel %vm1104_vm3, %v977_v8, 0.0  ;;  %v925_v18 = vmax.f32 %v677_v9, 0.0  ;;  %v3642_v8 = vld [vmem:[%s4831_s3 + $0x5] ss:$0 sm:$0xff]  ;;  %1426 = vst.msk [vmem:[#allocation2 + $0x168] sm:$0xff] %vm1380_vm2, %v1371_v62  ;;  %v3237_v10 = vpop.f32.mrb[4].mxu1 }
  0xf4   : > { %1384 = vst.msk [vmem:[#allocation2 + $0x18] sm:$0xff] %vm1380_vm2, %v1329_v17  ;;  %v924_v20 = vmax.f32 %v672_v14, 0.0  ;;  %v3174_v21 = vpop.f32.mrb[6].mxu0  ;;  %v1370_v15 = vsel %vm1163_vm4, %v1018_v56, 0.0  ;;  %v1021_v17 = vmin.f32 %v967_v0, 6.0  ;;  %v966_v23 = vmax.f32 %v3624_v57, 0.0 }
  0xf5   : > { %v979_v26 = vmin.f32 %v925_v18, 6.0  ;;  %v687_v27 = vadd.f32 %v3174_v21, %v3567_v63  ;;  %v681_v28 = vpop.f32.mrb[7].mxu0  ;;  %v3652_v18 = vpop.f32.mrb[5].mxu1  ;;  %v3658_v21 = vld [vmem:[%s4831_s3 + $0x6] ss:$0 sm:$0xff]  ;;  %1425 = vst.msk [vmem:[#allocation2 + $0x160] sm:$0xff] %vm1380_vm2, %v1370_v15  ;;  %v3669_v31 = vadd.f32 %v3237_v10, %v3567_v63 }
  0xf6   : > { %v978_v33 = vmin.f32 %v924_v20, 6.0  ;;  %v682_v34 = vadd.f32 %v3567_v63, %v681_v28  ;;  %v1373_v30 = vsel %vm1163_vm4, %v1021_v17, 0.0 }
  0xf7   : > { %v1331_v37 = vsel %vm1163_vm4, %v979_v26, 0.0  ;;  %v927_v38 = vmax.f32 %v687_v27, 0.0  ;;  %1428 = vst.msk [vmem:[#allocation2 + $0x178] sm:$0xff] %vm1380_vm2, %v1373_v30 }
  0xf8   : > { %1386 = vst.msk [vmem:[#allocation2 + $0x28] sm:$0xff] %vm1380_vm2, %v1331_v37  ;;  %1385 = vst.msk [vmem:[#allocation2 + $0x20] sm:$0xff] %vm1380_vm2, %v978_v33  ;;  %v926_v41 = vmax.f32 %v682_v34, 0.0  ;;  %v3177_v42 = vpop.f32.mrb[8].mxu0 }
  0xf9   : > { %v981_v47 = vmin.f32 %v927_v38, 6.0  ;;  %v697_v48 = vadd.f32 %v3177_v42, %v3567_v63  ;;  %v691_v49 = vpop.f32.mrb[9].mxu0  ;;  %v3240_v38 = vpop.f32.mrb[6].mxu1 }
  0xfa   : > { %v980_v54 = vmin.f32 %v926_v41, 6.0  ;;  %v692_v55 = vadd.f32 %v3567_v63, %v691_v49  ;;  %v3686_v46 = vpop.f32.mrb[7].mxu1  ;;  %v3692_v49 = vld [vmem:[%s4831_s3 + $0x7] ss:$0 sm:$0xff] }
  0xfb   : > { %1388 = vst.msk [vmem:[#allocation2 + $0x38] sm:$0xff] %vm1380_vm2, %v981_v47  ;;  %v929_v58 = vmax.f32 %v697_v48, 0.0  ;;  %v1651_v59 = vld [vmem:[#allocation2 + $0x18] sm:$0xff] }
  0xfc   : > { %v1332_v2 = vsel %vm1104_vm3, %v980_v54, 0.0  ;;  %v928_v3 = vmax.f32 %v692_v55, 0.0  ;;  %v3180_v4 = vpop.f32.mrb[10].mxu0  ;;  %v1691_v5 = vmul.f32 %v3619_v50, %v1651_v59  ;;  %v3645_v9 = vmul.f32 %v3579_v7, %v1651_v59  ;;  %v3703_v55 = vld [vmem:[%s4831_s3 + $0x8] ss:$0 sm:$0xff] }
  0xfd   : > { %1387 = vst.msk [vmem:[#allocation2 + $0x30] sm:$0xff] %vm1380_vm2, %v1332_v2  ;;  %v983_v11 = vmin.f32 %v929_v58, 6.0  ;;  %v707_v12 = vadd.f32 %v3180_v4, %v3567_v63  ;;  %v701_v14 = vpop.f32.mrb[11].mxu0 }
  0xfe   : > { %v982_v19 = vmin.f32 %v928_v3, 6.0  ;;  %v702_v20 = vadd.f32 %v3567_v63, %v701_v14  ;;  %v2116_v22 = vadd.f32 %v1691_v5, %v1618_v29 }
  0xff   : > { %v1335_v24 = vsel %vm1104_vm3, %v983_v11, 0.0  ;;  %v931_v25 = vmax.f32 %v707_v12, 0.0  ;;  %v1723_v26 = vld [vmem:[#allocation2 + $0x19] sm:$0xff]  ;;  %v3676_v36 = vld [vmem:[#allocation2 + $0x21] sm:$0xff] }
 0x100   : > { %v1795_v27 = vld [vmem:[#allocation2 + $0x1a] sm:$0xff]  ;;  %1390 = vst.msk [vmem:[#allocation2 + $0x48] sm:$0xff] %vm1380_vm2, %v1335_v24  ;;  %v1334_v29 = vsel %vm1163_vm4, %v982_v19, 0.0  ;;  %v930_v32 = vmax.f32 %v702_v20, 0.0  ;;  %v3183_v33 = vpop.f32.mrb[12].mxu0  ;;  %v1763_v34 = vmul.f32 %v3630_v60, %v1723_v26  ;;  %v3678_v37 = vld [vmem:[#allocation2 + $0x22] sm:$0xff]  ;;  %v2212_v42 = vadd.f32 %v2116_v22, %v3610_v43 }
 0x101   : > { %v3664_v28 = vld [vmem:[#allocation2 + $0x20] sm:$0xff]  ;;  %v1835_v35 = vmul.f32 %v3642_v8, %v1795_v27  ;;  %1389 = vst.msk [vmem:[#allocation2 + $0x40] sm:$0xff] %vm1380_vm2, %v1334_v29  ;;  %v985_v39 = vmin.f32 %v931_v25, 6.0  ;;  %v717_v40 = vadd.f32 %v3183_v33, %v3567_v63  ;;  %v711_v41 = vpop.f32.mrb[13].mxu0  ;;  %v1764_v52 = vmul.f32 %v3630_v60, %v3676_v36 }
 0x102   : > { %v1692_v45 = vmul.f32 %v3619_v50, %v3664_v28  ;;  %v984_v47 = vmin.f32 %v930_v32, 6.0  ;;  %v712_v48 = vadd.f32 %v3567_v63, %v711_v41  ;;  %v3696_v53 = vld [vmem:[#allocation2 + $0x38] sm:$0xff]  ;;  %v1836_v56 = vmul.f32 %v3642_v8, %v3678_v37 }
 0x103   : > { %v2148_v51 = vadd.f32 %v1835_v35, %v1763_v34  ;;  %v1337_v43 = vsel %vm1163_vm4, %v985_v39, 0.0  ;;  %v933_v54 = vmax.f32 %v717_v40, 0.0  ;;  %v1909_v58 = vmul.f32 %v3658_v21, %v3696_v53 }
 0x104   : > { %1392 = vst.msk [vmem:[#allocation2 + $0x58] sm:$0xff] %vm1380_vm2, %v1337_v43  ;;  %1391 = vst.msk [vmem:[#allocation2 + $0x50] sm:$0xff] %vm1380_vm2, %v984_v47  ;;  %v932_v59 = vmax.f32 %v712_v48, 0.0  ;;  %v3186_v62 = vpop.f32.mrb[14].mxu0  ;;  %v3711_v0 = vld [vmem:[#allocation2 + $0x30] sm:$0xff]  ;;  %v2117_v4 = vadd.f32 %v1692_v45, %v3613_v44  ;;  %v1548_v5 = vmul.f32 %v3585_v13, %v1723_v26  ;;  %v1620_v10 = vmul.f32 %v3591_v16, %v1795_v27 }
 0x105   : > { %v3713_v2 = vld [vmem:[#allocation2 + $0x31] sm:$0xff]  ;;  %v987_v11 = vmin.f32 %v933_v54, 6.0  ;;  %v727_v12 = vadd.f32 %v3186_v62, %v3567_v63  ;;  %v721_v14 = vpop.f32.mrb[15].mxu0  ;;  %v1908_v15 = vmul.f32 %v3658_v21, %v3711_v0  ;;  %v2149_v22 = vadd.f32 %v1836_v56, %v1764_v52 }
 0x106   : > { %v3715_v3 = vld [vmem:[#allocation2 + $0x32] sm:$0xff]  ;;  %v1980_v17 = vmul.f32 %v3692_v49, %v3713_v2  ;;  %v986_v19 = vmin.f32 %v932_v59, 6.0  ;;  %v722_v20 = vadd.f32 %v3567_v63, %v721_v14  ;;  %v2213_v26 = vadd.f32 %v2117_v4, %v3632_v61 }
 0x107   : > { %v2052_v44 = vmul.f32 %v3703_v55, %v3715_v3  ;;  %1394 = vst.msk [vmem:[#allocation2 + $0x68] sm:$0xff] %vm1380_vm2, %v987_v11  ;;  %v935_v24 = vmax.f32 %v727_v12, 0.0  ;;  %v1693_v27 = vmul.f32 %v3619_v50, %v3711_v0  ;;  %v3732_v30 = vld [vmem:[#allocation2 + $0x48] sm:$0xff]  ;;  %v1765_v38 = vmul.f32 %v3630_v60, %v3713_v2 }
 0x108   : > { %v2180_v25 = vadd.f32 %v1980_v17, %v1908_v15  ;;  %v1338_v29 = vsel %vm1104_vm3, %v986_v19, 0.0  ;;  %v934_v32 = vmax.f32 %v722_v20, 0.0  ;;  %v3189_v33 = vpop.f32.mrb[16].mxu0  ;;  %v3736_v34 = vld [vmem:[#allocation2 + $0x39] sm:$0xff]  ;;  %v1837_v61 = vmul.f32 %v3642_v8, %v3715_v3 }
 0x109   : > { %v3738_v35 = vld [vmem:[#allocation2 + $0x3a] sm:$0xff]  ;;  %1393 = vst.msk [vmem:[#allocation2 + $0x60] sm:$0xff] %vm1380_vm2, %v1338_v29  ;;  %v989_v39 = vmin.f32 %v935_v24, 6.0  ;;  %v737_v40 = vadd.f32 %v3189_v33, %v3567_v63  ;;  %v731_v41 = vpop.f32.mrb[17].mxu0  ;;  %v1981_v47 = vmul.f32 %v3692_v49, %v3736_v34  ;;  %v1910_v54 = vmul.f32 %v3658_v21, %v3732_v30 }
 0x10a   : > { %v2244_v45 = vadd.f32 %v2180_v25, %v2148_v51  ;;  %v988_v48 = vmin.f32 %v934_v32, 6.0  ;;  %v732_v52 = vadd.f32 %v3567_v63, %v731_v41  ;;  %v2053_v43 = vmul.f32 %v3703_v55, %v3738_v35  ;;  %v3765_v17 = vld [vmem:[%s4832_s4] ss:$0 sm:$0xff] }
 0x10b   : > { %v1341_v56 = vsel %vm1104_vm3, %v989_v39, 0.0  ;;  %v937_v59 = vmax.f32 %v737_v40, 0.0  ;;  %v2181_v4 = vadd.f32 %v1981_v47, %v1909_v58  ;;  %v3755_v11 = vld [vmem:[#allocation2 + $0x49] sm:$0xff]  ;;  %v2086_v39 = vadd.f32 %v1548_v5, %v3645_v9 }
 0x10c   : > { %v2276_v62 = vadd.f32 %v2244_v45, %v2212_v42  ;;  %v3757_v51 = vld [vmem:[#allocation2 + $0x4a] sm:$0xff]  ;;  %1396 = vst.msk [vmem:[#allocation2 + $0x78] sm:$0xff] %vm1380_vm2, %v1341_v56  ;;  %v1340_v12 = vsel %vm1163_vm4, %v988_v48, 0.0  ;;  %v936_v14 = vmax.f32 %v732_v52, 0.0  ;;  %v3192_v15 = vpop.f32.mrb[18].mxu0  ;;  %v1982_v42 = vmul.f32 %v3692_v49, %v3755_v11 }
 0x10d   : > { %v2054_v58 = vmul.f32 %v3703_v55, %v3757_v51  ;;  %1395 = vst.msk [vmem:[#allocation2 + $0x70] sm:$0xff] %vm1380_vm2, %v1340_v12  ;;  %v991_v19 = vmin.f32 %v937_v59, 6.0  ;;  %v747_v20 = vadd.f32 %v3192_v15, %v3567_v63  ;;  %v741_v24 = vpop.f32.mrb[19].mxu0  ;;  %v2245_v29 = vadd.f32 %v2181_v4, %v2149_v22 }
 0x10e   : > { %v2308_v25 = vadd.f32 %v2276_v62, %v2052_v44  ;;  %v990_v32 = vmin.f32 %v936_v14, 6.0  ;;  %v742_v33 = vadd.f32 %v3567_v63, %v741_v24  ;;  %v2118_v40 = vadd.f32 %v1693_v27, %v1620_v10 }
 0x10f   : > { %v1343_v41 = vsel %vm1163_vm4, %v991_v19, 0.0  ;;  %v939_v45 = vmax.f32 %v747_v20, 0.0  ;;  %v2277_v48 = vadd.f32 %v2245_v29, %v2213_v26  ;;  %v2150_v22 = vadd.f32 %v1837_v61, %v1765_v38 }
 0x110   : > { %v2347_v47 = vadd.f32 %v3765_v17, %v2308_v25  ;;  %1398 = vst.msk [vmem:[#allocation2 + $0x88] sm:$0xff] %vm1380_vm2, %v1343_v41  ;;  %1397 = vst.msk [vmem:[#allocation2 + $0x80] sm:$0xff] %vm1380_vm2, %v990_v32  ;;  %v938_v52 = vmax.f32 %v742_v33, 0.0  ;;  %v3195_v44 = vpop.f32.mrb[20].mxu0  ;;  %v2182_v56 = vadd.f32 %v1982_v42, %v1910_v54  ;;  %v2214_v59 = vadd.f32 %v2118_v40, %v2086_v39  ;;  %v3797_v33 = vld [vmem:[#allocation2 + $0x50] sm:$0xff] }
 0x111   : > { %v993_v62 = vmin.f32 %v939_v45, 6.0  ;;  %v757_v9 = vadd.f32 %v3195_v44, %v3567_v63  ;;  %v751_v5 = vpop.f32.mrb[21].mxu0  ;;  %v2309_v27 = vadd.f32 %v2277_v48, %v2053_v43  ;;  %v1477_v26 = vmul.f32 %v3579_v7, %v3664_v28  ;;  %v3802_v45 = vld [vmem:[#allocation2 + $0x51] sm:$0xff] }
 0x112   : > { %v2379_v10 = vmax.f32 %v2347_v47, 0.0  ;;  %v992_v4 = vmin.f32 %v938_v52, 6.0  ;;  %v752_v12 = vadd.f32 %v3567_v63, %v751_v5  ;;  %v2246_v14 = vadd.f32 %v2182_v56, %v2150_v22  ;;  %v3804_v47 = vld [vmem:[#allocation2 + $0x52] sm:$0xff] }
 0x113   : > { %1400 = vst.msk [vmem:[#allocation2 + $0x98] sm:$0xff] %vm1380_vm2, %v993_v62  ;;  %v941_v15 = vmax.f32 %v757_v9, 0.0  ;;  %v2348_v38 = vadd.f32 %v3765_v17, %v2309_v27  ;;  %v1549_v61 = vmul.f32 %v3585_v13, %v3676_v36  ;;  %v1621_v24 = vmul.f32 %v3591_v16, %v3678_v37 }
 0x114   : > { %v2411_v19 = vmin.f32 %v2379_v10, 6.0  ;;  %v1344_v54 = vsel %vm1104_vm3, %v992_v4, 0.0  ;;  %v940_v43 = vmax.f32 %v752_v12, 0.0  ;;  %v3198_v42 = vpop.f32.mrb[22].mxu0  ;;  %v2278_v20 = vadd.f32 %v2246_v14, %v2214_v59 }
 0x115   : > { %1399 = vst.msk [vmem:[#allocation2 + $0x90] sm:$0xff] %vm1380_vm2, %v1344_v54  ;;  %v995_v28 = vmin.f32 %v941_v15, 6.0  ;;  %v767_v25 = vadd.f32 %v3198_v42, %v3567_v63  ;;  %v761_v29 = vpop.f32.mrb[23].mxu0  ;;  %v2380_v32 = vmax.f32 %v2348_v38, 0.0  ;;  %v1694_v36 = vmul.f32 %v3619_v50, %v3696_v53 }
 0x116   : > { %3250 = vmatprep.mubr.msk.f32.mxu1 %vm1380_vm2, %v2411_v19  ;;  %v994_v39 = vmin.f32 %v940_v43, 6.0  ;;  %v762_v40 = vadd.f32 %v3567_v63, %v761_v29  ;;  %v2310_v41 = vadd.f32 %v2278_v20, %v2054_v58  ;;  %v1766_v37 = vmul.f32 %v3630_v60, %v3736_v34 }
 0x117   : > { %v1347_v48 = vsel %vm1104_vm3, %v995_v28, 0.0  ;;  %v943_v52 = vmax.f32 %v767_v25, 0.0  ;;  %v2412_v44 = vmin.f32 %v2380_v32, 6.0  ;;  %v1838_v22 = vmul.f32 %v3642_v8, %v3738_v35 }
 0x118   : > { %1402 = vst.msk [vmem:[#allocation2 + $0xa8] sm:$0xff] %vm1380_vm2, %v1347_v48  ;;  %v1346_v58 = vsel %vm1163_vm4, %v994_v39, 0.0  ;;  %v942_v56 = vmax.f32 %v762_v40, 0.0  ;;  %v3201_v59 = vpop.f32.mrb[24].mxu0  ;;  %v2349_v62 = vadd.f32 %v3765_v17, %v2310_v41  ;;  %v1911_v9 = vmul.f32 %v3658_v21, %v3797_v33 }
 0x119   : > { %1401 = vst.msk [vmem:[#allocation2 + $0xa0] sm:$0xff] %vm1380_vm2, %v1346_v58  ;;  %v997_v5 = vmin.f32 %v943_v52, 6.0  ;;  %v777_v10 = vadd.f32 %v3201_v59, %v3567_v63  ;;  %v771_v27 = vpop.f32.mrb[25].mxu0  ;;  %3251 = vmatmul.mubr.msk.f32.vlgmr.msra.gmra.mrb[10].mxu1 %vm1380_vm2, %v2412_v44  ;;  %v1983_v4 = vmul.f32 %v3692_v49, %v3802_v45  ;;  %v2055_v12 = vmul.f32 %v3703_v55, %v3804_v47 }
 0x11a   : > { %v996_v14 = vmin.f32 %v942_v56, 6.0  ;;  %v772_v15 = vadd.f32 %v3567_v63, %v771_v27  ;;  %v2381_v19 = vmax.f32 %v2349_v62, 0.0  ;;  %v2087_v38 = vadd.f32 %v1549_v61, %v1477_v26 }
 0x11b   : > { %v1349_v54 = vsel %vm1163_vm4, %v997_v5, 0.0  ;;  %v945_v43 = vmax.f32 %v777_v10, 0.0  ;;  %v2119_v42 = vadd.f32 %v1694_v36, %v1621_v24  ;;  %v2151_v20 = vadd.f32 %v1838_v22, %v1766_v37  ;;  %v3833_v36 = vld [vmem:[#allocation2 + $0x60] sm:$0xff] }
 0x11c   : > { %1404 = vst.msk [vmem:[#allocation2 + $0xb8] sm:$0xff] %vm1380_vm2, %v1349_v54  ;;  %1403 = vst.msk [vmem:[#allocation2 + $0xb0] sm:$0xff] %vm1380_vm2, %v996_v14  ;;  %v944_v28 = vmax.f32 %v772_v15, 0.0  ;;  %v3204_v25 = vpop.f32.mrb[26].mxu0  ;;  %v2413_v29 = vmin.f32 %v2381_v19, 6.0  ;;  %v2183_v32 = vadd.f32 %v1983_v4, %v1911_v9  ;;  %v1478_v39 = vmul.f32 %v3579_v7, %v3711_v0  ;;  %v3839_v0 = vld [vmem:[#allocation2 + $0x61] sm:$0xff] }
 0x11d   : > { %v999_v40 = vmin.f32 %v945_v43, 6.0  ;;  %v787_v26 = vadd.f32 %v3204_v25, %v3567_v63  ;;  %v781_v61 = vpop.f32.mrb[27].mxu0  ;;  %v2215_v41 = vadd.f32 %v2119_v42, %v2087_v38  ;;  %v1550_v24 = vmul.f32 %v3585_v13, %v3713_v2  ;;  %v3841_v22 = vld [vmem:[#allocation2 + $0x62] sm:$0xff] }
 0x11e   : > { %v998_v37 = vmin.f32 %v944_v28, 6.0  ;;  %3253 = vmatprep.mubr.msk.f32.mxu1 %vm1380_vm2, %v2413_v29  ;;  %v782_v48 = vadd.f32 %v3567_v63, %v781_v61  ;;  %v2247_v52 = vadd.f32 %v2183_v32, %v2151_v20  ;;  %v1622_v44 = vmul.f32 %v3591_v16, %v3715_v3 }
 0x11f   : > { %1406 = vst.msk [vmem:[#allocation2 + $0xc8] sm:$0xff] %vm1380_vm2, %v999_v40  ;;  %v947_v58 = vmax.f32 %v787_v26, 0.0  ;;  %v1695_v2 = vmul.f32 %v3619_v50, %v3732_v30  ;;  %v1767_v56 = vmul.f32 %v3630_v60, %v3755_v11  ;;  %v1839_v59 = vmul.f32 %v3642_v8, %v3757_v51 }
 0x120   : > { %v1350_v62 = vsel %vm1104_vm3, %v998_v37, 0.0  ;;  %v946_v3 = vmax.f32 %v782_v48, 0.0  ;;  %v2279_v9 = vadd.f32 %v2247_v52, %v2215_v41  ;;  %v3207_v5 = vpop.f32.mrb[28].mxu0  ;;  %v1912_v10 = vmul.f32 %v3658_v21, %v3833_v36 }
 0x121   : > { %1405 = vst.msk [vmem:[#allocation2 + $0xc0] sm:$0xff] %vm1380_vm2, %v1350_v62  ;;  %v1001_v27 = vmin.f32 %v947_v58, 6.0  ;;  %v797_v4 = vadd.f32 %v3207_v5, %v3567_v63  ;;  %v791_v14 = vpop.f32.mrb[29].mxu0  ;;  %v1984_v15 = vmul.f32 %v3692_v49, %v3839_v0  ;;  %v2056_v19 = vmul.f32 %v3703_v55, %v3841_v22  ;;  %v3880_v5 = vld [vmem:[#allocation2 + $0x69] sm:$0xff] }
 0x122   : > { %v1000_v38 = vmin.f32 %v946_v3, 6.0  ;;  %v2311_v54 = vadd.f32 %v2279_v9, %v2055_v12  ;;  %v792_v43 = vadd.f32 %v3567_v63, %v791_v14  ;;  %v2088_v42 = vadd.f32 %v1550_v24, %v1478_v39 }
 0x123   : > { %v1353_v20 = vsel %vm1104_vm3, %v1001_v27, 0.0  ;;  %v949_v28 = vmax.f32 %v797_v4, 0.0  ;;  %v2120_v25 = vadd.f32 %v1695_v2, %v1622_v44  ;;  %v2152_v29 = vadd.f32 %v1839_v59, %v1767_v56  ;;  %v3872_v56 = vld [vmem:[#allocation2 + $0x68] sm:$0xff] }
 0x124   : > { %1408 = vst.msk [vmem:[#allocation2 + $0xd8] sm:$0xff] %vm1380_vm2, %v1353_v20  ;;  %v1352_v32 = vsel %vm1163_vm4, %v1000_v38, 0.0  ;;  %v2350_v40 = vadd.f32 %v3765_v17, %v2311_v54  ;;  %v948_v26 = vmax.f32 %v792_v43, 0.0  ;;  %v2184_v61 = vadd.f32 %v1984_v15, %v1912_v10  ;;  %v3210_v41 = vpop.f32.mrb[30].mxu0 }
 0x125   : > { %1407 = vst.msk [vmem:[#allocation2 + $0xd0] sm:$0xff] %vm1380_vm2, %v1352_v32  ;;  %v1003_v12 = vmin.f32 %v949_v28, 6.0  ;;  %v2216_v39 = vadd.f32 %v2120_v25, %v2088_v42  ;;  %v807_v24 = vadd.f32 %v3210_v41, %v3567_v63  ;;  %v801_v37 = vpop.f32.mrb[31].mxu0  ;;  %v1479_v48 = vmul.f32 %v3579_v7, %v3696_v53  ;;  %v3882_v53 = vld [vmem:[#allocation2 + $0x6a] sm:$0xff] }
 0x126   : > { %v2382_v52 = vmax.f32 %v2350_v40, 0.0  ;;  %v1002_v44 = vmin.f32 %v948_v26, 6.0  ;;  %v2248_v58 = vadd.f32 %v2184_v61, %v2152_v29  ;;  %v802_v2 = vadd.f32 %v3567_v63, %v801_v37 }
 0x127   : > { %v1355_v59 = vsel %vm1163_vm4, %v1003_v12, 0.0  ;;  %v951_v62 = vmax.f32 %v807_v24, 0.0  ;;  %v1551_v3 = vmul.f32 %v3585_v13, %v3736_v34  ;;  %v1623_v9 = vmul.f32 %v3591_v16, %v3738_v35  ;;  %v3908_v24 = vld [vmem:[#allocation2 + $0x79] sm:$0xff] }
 0x128   : > { %v2414_v10 = vmin.f32 %v2382_v52, 6.0  ;;  %1410 = vst.msk [vmem:[#allocation2 + $0xe8] sm:$0xff] %vm1380_vm2, %v1355_v59  ;;  %1409 = vst.msk [vmem:[#allocation2 + $0xe0] sm:$0xff] %vm1380_vm2, %v1002_v44  ;;  %v2280_v27 = vadd.f32 %v2248_v58, %v2216_v39  ;;  %v950_v4 = vmax.f32 %v802_v2, 0.0  ;;  %v1696_v14 = vmul.f32 %v3619_v50, %v3797_v33  ;;  %v3213_v15 = vpop.f32.mrb[32].mxu0  ;;  %v3906_v39 = vld [vmem:[#allocation2 + $0x78] sm:$0xff] }
 0x129   : > { %v1005_v38 = vmin.f32 %v951_v62, 6.0  ;;  %v1768_v34 = vmul.f32 %v3630_v60, %v3802_v45  ;;  %v1840_v35 = vmul.f32 %v3642_v8, %v3804_v47  ;;  %v1913_v54 = vmul.f32 %v3658_v21, %v3872_v56  ;;  %v811_v43 = vpop.f32.mrb[33].mxu0  ;;  %v3915_v2 = vld [vmem:[#allocation2 + $0x7a] sm:$0xff] }
 0x12a   : > { %3254 = vmatmul.mubr.msk.f32.gmra.mrb[12].mxu1 %vm1380_vm2, %v2414_v10  ;;  %v2312_v42 = vadd.f32 %v2280_v27, %v2056_v19  ;;  %v1004_v20 = vmin.f32 %v950_v4, 6.0  ;;  %v1985_v28 = vmul.f32 %v3692_v49, %v3880_v5  ;;  %v2057_v25 = vmul.f32 %v3703_v55, %v3882_v53 }
 0x12b   : > { %1412 = vst.msk [vmem:[#allocation2 + $0xf8] sm:$0xff] %vm1380_vm2, %v1005_v38  ;;  %v2089_v29 = vadd.f32 %v1551_v3, %v1479_v48  ;;  %v2121_v32 = vadd.f32 %v1696_v14, %v1623_v9  ;;  %v2153_v40 = vadd.f32 %v1840_v35, %v1768_v34  ;;  %v817_v26 = vadd.f32 %v3213_v15, %v3567_v63 }
 0x12c   : > { %v2351_v61 = vadd.f32 %v3765_v17, %v2312_v42  ;;  %v1356_v41 = vsel %vm1104_vm3, %v1004_v20, 0.0  ;;  %v2185_v19 = vadd.f32 %v1985_v28, %v1913_v54  ;;  %v1480_v12 = vmul.f32 %v3579_v7, %v3732_v30  ;;  %v3216_v37 = vpop.f32.mrb[34].mxu0 }
 0x12d   : > { %1411 = vst.msk [vmem:[#allocation2 + $0xf0] sm:$0xff] %vm1380_vm2, %v1356_v41  ;;  %v2217_v48 = vadd.f32 %v2121_v32, %v2089_v29  ;;  %v953_v52 = vmax.f32 %v817_v26, 0.0  ;;  %v1552_v44 = vmul.f32 %v3585_v13, %v3755_v11  ;;  %v1624_v58 = vmul.f32 %v3591_v16, %v3757_v51  ;;  %v821_v59 = vpop.f32.mrb[35].mxu0  ;;  %v3944_v41 = vld [vmem:[#allocation2 + $0x81] sm:$0xff] }
 0x12e   : > { %v2383_v62 = vmax.f32 %v2351_v61, 0.0  ;;  %v2249_v30 = vadd.f32 %v2185_v19, %v2153_v40  ;;  %v1697_v3 = vmul.f32 %v3619_v50, %v3833_v36  ;;  %v1769_v9 = vmul.f32 %v3630_v60, %v3839_v0  ;;  %v3942_v61 = vld [vmem:[#allocation2 + $0x80] sm:$0xff] }
 0x12f   : > { %v1007_v10 = vmin.f32 %v953_v52, 6.0  ;;  %v1841_v27 = vmul.f32 %v3642_v8, %v3841_v22  ;;  %v1914_v11 = vmul.f32 %v3658_v21, %v3906_v39  ;;  %v1986_v51 = vmul.f32 %v3692_v49, %v3908_v24  ;;  %v3946_v19 = vld [vmem:[#allocation2 + $0x82] sm:$0xff] }
 0x130   : > { %v2415_v4 = vmin.f32 %v2383_v62, 6.0  ;;  %v2281_v14 = vadd.f32 %v2249_v30, %v2217_v48  ;;  %v2058_v15 = vmul.f32 %v3703_v55, %v3915_v2  ;;  %v2090_v38 = vadd.f32 %v1552_v44, %v1480_v12  ;;  %v3929_v34 = vpop.f32.mrb[36].mxu0 }
 0x131   : > { %v1359_v35 = vsel %vm1104_vm3, %v1007_v10, 0.0  ;;  %v2122_v54 = vadd.f32 %v1697_v3, %v1624_v58  ;;  %v2154_v42 = vadd.f32 %v1841_v27, %v1769_v9  ;;  %v2186_v20 = vadd.f32 %v1986_v51, %v1914_v11  ;;  %v3933_v28 = vpop.f32.mrb[37].mxu0 }
 0x132   : > { %3256 = vmatprep.mubr.msk.f32.mxu1 %vm1380_vm2, %v2415_v4  ;;  %v2313_v29 = vadd.f32 %v2281_v14, %v2057_v25  ;;  %1414 = vst.msk [vmem:[#allocation2 + $0x108] sm:$0xff] %vm1380_vm2, %v1359_v35  ;;  %v812_v32 = vadd.f32 %v3567_v63, %v811_v43  ;;  %v1481_v40 = vmul.f32 %v3579_v7, %v3797_v33 }
 0x133   : > { %v1553_v26 = vmul.f32 %v3585_v13, %v3802_v45  ;;  %v2218_v12 = vadd.f32 %v2122_v54, %v2090_v38  ;;  %v2250_v48 = vadd.f32 %v2186_v20, %v2154_v42  ;;  %v1625_v25 = vmul.f32 %v3591_v16, %v3804_v47 }
 0x134   : > { %v1698_v43 = vmul.f32 %v3619_v50, %v3872_v56  ;;  %v2352_v52 = vadd.f32 %v3765_v17, %v2313_v29  ;;  %v952_v33 = vmax.f32 %v812_v32, 0.0  ;;  %v1770_v45 = vmul.f32 %v3630_v60, %v3880_v5  ;;  %v3957_v58 = vpop.f32.mrb[38].mxu0 }
 0x135   : > { %v1842_v44 = vmul.f32 %v3642_v8, %v3882_v53  ;;  %v2282_v62 = vadd.f32 %v2250_v48, %v2218_v12  ;;  %v1915_v30 = vmul.f32 %v3658_v21, %v3942_v61  ;;  %v1987_v47 = vmul.f32 %v3692_v49, %v3944_v41  ;;  %v3965_v9 = vpop.f32.mrb[39].mxu0  ;;  %v3977_v48 = vld [vmem:[#allocation2 + $0x90] sm:$0xff] }
 0x136   : > { %v2059_v3 = vmul.f32 %v3703_v55, %v3946_v19  ;;  %v2384_v10 = vmax.f32 %v2352_v52, 0.0  ;;  %v1006_v27 = vmin.f32 %v952_v33, 6.0  ;;  %v2091_v11 = vadd.f32 %v1553_v26, %v1481_v40 }
 0x137   : > { %v2123_v51 = vadd.f32 %v1698_v43, %v1625_v25  ;;  %v2314_v4 = vadd.f32 %v2282_v62, %v2058_v15  ;;  %v2155_v14 = vadd.f32 %v1842_v44, %v1770_v45  ;;  %v2187_v38 = vadd.f32 %v1987_v47, %v1915_v30  ;;  %v3990_v45 = vld [vmem:[#allocation2 + $0x92] sm:$0xff] }
 0x138   : > { %v827_v35 = vadd.f32 %v3216_v37, %v3567_v63  ;;  %v2416_v54 = vmin.f32 %v2384_v10, 6.0  ;;  %v1358_v42 = vsel %vm1163_vm4, %v1006_v27, 0.0  ;;  %v822_v29 = vadd.f32 %v3567_v63, %v821_v59  ;;  %v3971_v32 = vpop.f32.mrb[40].mxu0  ;;  %v3979_v37 = vld [vmem:[#allocation2 + $0x91] sm:$0xff] }
 0x139   : > { %v2219_v20 = vadd.f32 %v2123_v51, %v2091_v11  ;;  %v2353_v12 = vadd.f32 %v3765_v17, %v2314_v4  ;;  %1413 = vst.msk [vmem:[#allocation2 + $0x100] sm:$0xff] %vm1380_vm2, %v1358_v42  ;;  %v2251_v40 = vadd.f32 %v2187_v38, %v2155_v14  ;;  %v1482_v15 = vmul.f32 %v3579_v7, %v3833_v36  ;;  %v3981_v25 = vpop.f32.mrb[41].mxu0 }
 0x13a   : > { %v955_v26 = vmax.f32 %v827_v35, 0.0  ;;  %3257 = vmatmul.mubr.msk.f32.gmra.mrb[14].mxu1 %vm1380_vm2, %v2416_v54  ;;  %v954_v59 = vmax.f32 %v822_v29, 0.0  ;;  %v1554_v43 = vmul.f32 %v3585_v13, %v3839_v0  ;;  %v1626_v52 = vmul.f32 %v3591_v16, %v3841_v22 }
 0x13b   : > { %v1699_v33 = vmul.f32 %v3619_v50, %v3906_v39  ;;  %v2385_v36 = vmax.f32 %v2353_v12, 0.0  ;;  %v2283_v44 = vadd.f32 %v2251_v40, %v2219_v20  ;;  %v1771_v30 = vmul.f32 %v3630_v60, %v3908_v24 }
 0x13c   : > { %v1009_v62 = vmin.f32 %v955_v26, 6.0  ;;  %v1008_v47 = vmin.f32 %v954_v59, 6.0  ;;  %v1843_v10 = vmul.f32 %v3642_v8, %v3915_v2  ;;  %v1916_v0 = vmul.f32 %v3658_v21, %v3977_v48  ;;  %v4000_v27 = vpop.f32.mrb[42].mxu0  ;;  %v4018_v26 = vld [vmem:[#allocation2 + $0x98] sm:$0xff] }
 0x13d   : > { %v1988_v22 = vmul.f32 %v3692_v49, %v3979_v37  ;;  %v2417_v11 = vmin.f32 %v2385_v36, 6.0  ;;  %v2315_v51 = vadd.f32 %v2283_v44, %v2059_v3  ;;  %v2060_v14 = vmul.f32 %v3703_v55, %v3990_v45  ;;  %v4006_v38 = vpop.f32.mrb[43].mxu0 }
 0x13e   : > { %v1361_v4 = vsel %vm1163_vm4, %v1009_v62, 0.0  ;;  %1415 = vst.msk [vmem:[#allocation2 + $0x110] sm:$0xff] %vm1380_vm2, %v1008_v47  ;;  %v2092_v35 = vadd.f32 %v1554_v43, %v1482_v15  ;;  %v2124_v54 = vadd.f32 %v1699_v33, %v1626_v52  ;;  %v2156_v42 = vadd.f32 %v1843_v10, %v1771_v30  ;;  %v4024_v33 = vld [vmem:[#allocation2 + $0x99] sm:$0xff] }
 0x13f   : > { %1416 = vst.msk [vmem:[#allocation2 + $0x118] sm:$0xff] %vm1380_vm2, %v1361_v4  ;;  %v2188_v20 = vadd.f32 %v1988_v22, %v1916_v0  ;;  %3259 = vmatprep.mubr.msk.f32.mxu1 %vm1380_vm2, %v2417_v11  ;;  %v2354_v3 = vadd.f32 %v3765_v17, %v2315_v51  ;;  %v837_v29 = vadd.f32 %v3929_v34, %v3567_v63  ;;  %v4028_v62 = vld [vmem:[#allocation2 + $0x9a] sm:$0xff] }
 0x140   : > { %v832_v12 = vadd.f32 %v3567_v63, %v3933_v28  ;;  %v1483_v40 = vmul.f32 %v3579_v7, %v3872_v56  ;;  %v2220_v59 = vadd.f32 %v2124_v54, %v2092_v35  ;;  %v1555_v43 = vmul.f32 %v3585_v13, %v3880_v5 }
 0x141   : > { %v2252_v15 = vadd.f32 %v2188_v20, %v2156_v42  ;;  %v1627_v52 = vmul.f32 %v3591_v16, %v3882_v53  ;;  %v2386_v36 = vmax.f32 %v2354_v3, 0.0  ;;  %v957_v34 = vmax.f32 %v837_v29, 0.0  ;;  %v4046_v29 = vld [vmem:[#allocation2 + $0xa8] sm:$0xff] }
 0x142   : > { %v956_v44 = vmax.f32 %v832_v12, 0.0  ;;  %v1700_v28 = vmul.f32 %v3619_v50, %v3942_v61  ;;  %v1772_v30 = vmul.f32 %v3630_v60, %v3944_v41  ;;  %v1844_v5 = vmul.f32 %v3642_v8, %v3946_v19 }
 0x143   : > { %v2284_v56 = vadd.f32 %v2252_v15, %v2220_v59  ;;  %v1917_v53 = vmul.f32 %v3658_v21, %v4018_v26  ;;  %v2418_v47 = vmin.f32 %v2386_v36, 6.0  ;;  %v1011_v10 = vmin.f32 %v957_v34, 6.0  ;;  %v4054_v15 = vld [vmem:[#allocation2 + $0xa9] sm:$0xff] }
 0x144   : > { %v1010_v0 = vmin.f32 %v956_v44, 6.0  ;;  %v1989_v22 = vmul.f32 %v3692_v49, %v4024_v33  ;;  %v2061_v51 = vmul.f32 %v3703_v55, %v4028_v62  ;;  %v2093_v4 = vadd.f32 %v1555_v43, %v1483_v40  ;;  %v4056_v43 = vld [vmem:[#allocation2 + $0xaa] sm:$0xff] }
 0x145   : > { %v2316_v11 = vadd.f32 %v2284_v56, %v2060_v14  ;;  %v2125_v35 = vadd.f32 %v1700_v28, %v1627_v52  ;;  %3260 = vmatmul.mubr.msk.f32.gmra.mrb[16].mxu1 %vm1380_vm2, %v2418_v47  ;;  %1418 = vst.msk [vmem:[#allocation2 + $0x128] sm:$0xff] %vm1380_vm2, %v1011_v10  ;;  %v2157_v42 = vadd.f32 %v1844_v5, %v1772_v30 }
 0x146   : > { %v1362_v54 = vsel %vm1104_vm3, %v1010_v0, 0.0  ;;  %v2189_v20 = vadd.f32 %v1989_v22, %v1917_v53  ;;  %v847_v3 = vadd.f32 %v3957_v58, %v3567_v63  ;;  %v1484_v40 = vmul.f32 %v3579_v7, %v3906_v39 }
 0x147   : > { %v2355_v14 = vadd.f32 %v3765_v17, %v2316_v11  ;;  %1417 = vst.msk [vmem:[#allocation2 + $0x120] sm:$0xff] %vm1380_vm2, %v1362_v54  ;;  %v2221_v12 = vadd.f32 %v2125_v35, %v2093_v4  ;;  %v1556_v59 = vmul.f32 %v3585_v13, %v3908_v24  ;;  %v1628_v63 = vmul.f32 %v3591_v16, %v3915_v2  ;;  %v4077_v4 = vld [vmem:[%s4830_s2] ss:$0 sm:$0xff]  ;;  %v4081_v54 = vld [vmem:[#allocation2 + $0xb0] sm:$0xff] }
 0x148   : > { %v2253_v52 = vadd.f32 %v2189_v20, %v2157_v42  ;;  %v959_v36 = vmax.f32 %v847_v3, 0.0  ;;  %v1701_v58 = vmul.f32 %v3619_v50, %v3977_v48  ;;  %v1773_v44 = vmul.f32 %v3630_v60, %v3979_v37  ;;  %v4083_v42 = vld [vmem:[#allocation2 + $0xb1] sm:$0xff] }
 0x149   : > { %v2387_v34 = vmax.f32 %v2355_v14, 0.0  ;;  %v1845_v39 = vmul.f32 %v3642_v8, %v3990_v45  ;;  %v1918_v24 = vmul.f32 %v3658_v21, %v4046_v29  ;;  %v1990_v30 = vmul.f32 %v3692_v49, %v4054_v15 }
 0x14a   : > { %v2285_v28 = vadd.f32 %v2253_v52, %v2221_v12  ;;  %v1013_v56 = vmin.f32 %v959_v36, 6.0  ;;  %v2062_v2 = vmul.f32 %v3703_v55, %v4056_v43  ;;  %v2094_v53 = vadd.f32 %v1556_v59, %v1484_v40  ;;  %v4093_v12 = vld [vmem:[#allocation2 + $0xb2] sm:$0xff] }
 0x14b   : > { %v2419_v5 = vmin.f32 %v2387_v34, 6.0  ;;  %v2126_v47 = vadd.f32 %v1701_v58, %v1628_v63  ;;  %v2158_v10 = vadd.f32 %v1845_v39, %v1773_v44  ;;  %v2190_v11 = vadd.f32 %v1990_v30, %v1918_v24 }
 0x14c   : > { %v2317_v0 = vadd.f32 %v2285_v28, %v2061_v51  ;;  %v1365_v22 = vsel %vm1104_vm3, %v1013_v56, 0.0  ;;  %v842_v35 = vadd.f32 %v4077_v4, %v3965_v9  ;;  %v1485_v20 = vmul.f32 %v3579_v7, %v3942_v61 }
 0x14d   : > { %3262 = vmatprep.mubr.msk.f32.mxu1 %vm1380_vm2, %v2419_v5  ;;  %1420 = vst.msk [vmem:[#allocation2 + $0x138] sm:$0xff] %vm1380_vm2, %v1365_v22  ;;  %v2222_v51 = vadd.f32 %v2126_v47, %v2094_v53  ;;  %v1557_v3 = vmul.f32 %v3585_v13, %v3944_v41  ;;  %v1629_v14 = vmul.f32 %v3591_v16, %v3946_v19  ;;  %v1020_v30 = vmin.f32 %v966_v23, 6.0  ;;  %v4126_v23 = vld [vmem:[%s4831_s3] ss:$0 sm:$0xff] }
 0x14e   : > { %v2356_v9 = vadd.f32 %v3765_v17, %v2317_v0  ;;  %v2254_v40 = vadd.f32 %v2190_v11, %v2158_v10  ;;  %v958_v59 = vmax.f32 %v842_v35, 0.0  ;;  %v1702_v52 = vmul.f32 %v3619_v50, %v4018_v26  ;;  %v4133_v35 = vld [vmem:[%s4831_s3 + $0x1] ss:$0 sm:$0xff] }
 0x14f   : > { %v1774_v36 = vmul.f32 %v3630_v60, %v4024_v33  ;;  %v1846_v7 = vmul.f32 %v3642_v8, %v4028_v62  ;;  %v1919_v13 = vmul.f32 %v3658_v21, %v4081_v54  ;;  %v1991_v16 = vmul.f32 %v3692_v49, %v4083_v42  ;;  %1427 = vst.msk [vmem:[#allocation2 + $0x170] sm:$0xff] %vm1380_vm2, %v1020_v30 }
 0x150   : > { %v2388_v61 = vmax.f32 %v2356_v9, 0.0  ;;  %v2286_v41 = vadd.f32 %v2254_v40, %v2222_v51  ;;  %v1012_v19 = vmin.f32 %v958_v59, 6.0  ;;  %v2063_v63 = vmul.f32 %v3703_v55, %v4093_v12  ;;  %v4146_v9 = vld [vmem:[#allocation2 + $0xc1] sm:$0xff] }
 0x151   : > { %v2095_v58 = vadd.f32 %v1557_v3, %v1485_v20  ;;  %v2127_v34 = vadd.f32 %v1702_v52, %v1629_v14  ;;  %v2159_v44 = vadd.f32 %v1846_v7, %v1774_v36  ;;  %v2191_v39 = vadd.f32 %v1991_v16, %v1919_v13  ;;  %v4140_v3 = vld [vmem:[%s4831_s3 + $0x2] ss:$0 sm:$0xff] }
 0x152   : > { %v2420_v24 = vmin.f32 %v2388_v61, 6.0  ;;  %v2318_v28 = vadd.f32 %v2286_v41, %v2062_v2  ;;  %v1364_v56 = vsel %vm1163_vm4, %v1012_v19, 0.0  ;;  %v857_v47 = vadd.f32 %v4077_v4, %v3971_v32  ;;  %v4144_v14 = vld [vmem:[#allocation2 + $0xc0] sm:$0xff] }
 0x153   : > { %1419 = vst.msk [vmem:[#allocation2 + $0x130] sm:$0xff] %vm1380_vm2, %v1364_v56  ;;  %v2223_v5 = vadd.f32 %v2127_v34, %v2095_v58  ;;  %v2255_v53 = vadd.f32 %v2191_v39, %v2159_v44  ;;  %v969_v10 = vmax.f32 %v3669_v31, 0.0  ;;  %v852_v2 = vadd.f32 %v4077_v4, %v3981_v25  ;;  %v4153_v36 = vld [vmem:[#allocation2 + $0xc2] sm:$0xff] }
 0x154   : > { %3263 = vmatmul.mubr.msk.f32.gmra.mrb[18].mxu1 %vm1380_vm2, %v2420_v24  ;;  %v2357_v0 = vadd.f32 %v3765_v17, %v2318_v28  ;;  %v892_v57 = vadd.f32 %v4077_v4, %v3652_v18  ;;  %v1486_v31 = vmul.f32 %v4126_v23, %v3977_v48  ;;  %v961_v22 = vmax.f32 %v857_v47, 0.0 }
 0x155   : > { %v2287_v32 = vadd.f32 %v2255_v53, %v2223_v5  ;;  %v1023_v11 = vmin.f32 %v969_v10, 6.0  ;;  %v1558_v25 = vmul.f32 %v4133_v35, %v3979_v37  ;;  %v960_v51 = vmax.f32 %v852_v2, 0.0  ;;  %v4184_v2 = vld [vmem:[#allocation2 + $0xc9] sm:$0xff] }
 0x156   : > { %v2389_v18 = vmax.f32 %v2357_v0, 0.0  ;;  %v968_v20 = vmax.f32 %v892_v57, 0.0  ;;  %v1630_v48 = vmul.f32 %v4140_v3, %v3990_v45  ;;  %v1015_v59 = vmin.f32 %v961_v22, 6.0  ;;  %v4182_v0 = vld [vmem:[#allocation2 + $0xc8] sm:$0xff]  ;;  %v4208_v22 = vld [vmem:[%s4831_s3 + $0x5] ss:$0 sm:$0xff] }
 0x157   : > { %v2319_v40 = vadd.f32 %v2287_v32, %v2063_v63  ;;  %1430 = vst.msk [vmem:[#allocation2 + $0x188] sm:$0xff] %vm1380_vm2, %v1023_v11  ;;  %v1703_v37 = vmul.f32 %v3619_v50, %v4046_v29  ;;  %v1775_v52 = vmul.f32 %v3630_v60, %v4054_v15  ;;  %v1014_v13 = vmin.f32 %v960_v51, 6.0  ;;  %v4201_v32 = vld [vmem:[%s4831_s3 + $0x4] ss:$0 sm:$0xff]  ;;  %v4215_v51 = vld [vmem:[%s4831_s3 + $0x6] ss:$0 sm:$0xff] }
 0x158   : > { %v2421_v7 = vmin.f32 %v2389_v18, 6.0  ;;  %v1022_v16 = vmin.f32 %v968_v20, 6.0  ;;  %v1847_v45 = vmul.f32 %v3642_v8, %v4056_v43  ;;  %v1367_v41 = vsel %vm1163_vm4, %v1015_v59, 0.0 }
 0x159   : > { %v2358_v61 = vadd.f32 %v3765_v17, %v2319_v40  ;;  %v1920_v19 = vmul.f32 %v3658_v21, %v4144_v14  ;;  %v1992_v50 = vmul.f32 %v3692_v49, %v4146_v9  ;;  %1422 = vst.msk [vmem:[#allocation2 + $0x148] sm:$0xff] %vm1380_vm2, %v1367_v41  ;;  %1421 = vst.msk [vmem:[#allocation2 + $0x140] sm:$0xff] %vm1380_vm2, %v1014_v13 }
 0x15a   : > { %3265 = vmatprep.mubr.msk.f32.mxu1 %vm1380_vm2, %v2421_v7  ;;  %v1374_v60 = vsel %vm1104_vm3, %v1022_v16, 0.0  ;;  %v2064_v8 = vmul.f32 %v3703_v55, %v4153_v36  ;;  %v2096_v63 = vadd.f32 %v1558_v25, %v1486_v31  ;;  %v2128_v58 = vadd.f32 %v1703_v37, %v1630_v48 }
 0x15b   : > { %v2390_v34 = vmax.f32 %v2358_v61, 0.0  ;;  %1429 = vst.msk [vmem:[#allocation2 + $0x180] sm:$0xff] %vm1380_vm2, %v1374_v60  ;;  %v2160_v21 = vadd.f32 %v1847_v45, %v1775_v52  ;;  %v2192_v44 = vadd.f32 %v1992_v50, %v1920_v19  ;;  %v902_v39 = vadd.f32 %v4077_v4, %v3686_v46  ;;  %v4229_v61 = vld [vmem:[#allocation2 + $0xd8] sm:$0xff] }
 0x15c   : > { %v2224_v24 = vadd.f32 %v2128_v58, %v2096_v63  ;;  %v867_v28 = vadd.f32 %v4077_v4, %v4000_v27  ;;  %v862_v56 = vadd.f32 %v4077_v4, %v4006_v38  ;;  %v1487_v30 = vmul.f32 %v4126_v23, %v4018_v26  ;;  %v4191_v38 = vld [vmem:[%s4831_s3 + $0x3] ss:$0 sm:$0xff]  ;;  %v4195_v4 = vld [vmem:[#allocation2 + $0xca] sm:$0xff]  ;;  %v4241_v19 = vld [vmem:[#allocation2 + $0xda] sm:$0xff] }
 0x15d   : > { %v2422_v5 = vmin.f32 %v2390_v34, 6.0  ;;  %v2256_v53 = vadd.f32 %v2192_v44, %v2160_v21  ;;  %v970_v47 = vmax.f32 %v902_v39, 0.0  ;;  %v1559_v10 = vmul.f32 %v4133_v35, %v4024_v33  ;;  %v4261_v44 = vld [vmem:[%s4831_s3 + $0x8] ss:$0 sm:$0xff] }
 0x15e   : > { %v963_v46 = vmax.f32 %v867_v28, 0.0  ;;  %v962_v57 = vmax.f32 %v862_v56, 0.0  ;;  %v1631_v27 = vmul.f32 %v4140_v3, %v4028_v62  ;;  %v1704_v26 = vmul.f32 %v4191_v38, %v4081_v54 }
 0x15f   : > { %3266 = vmatmul.mubr.msk.f32.gmra.mrb[20].mxu1 %vm1380_vm2, %v2422_v5  ;;  %v2288_v33 = vadd.f32 %v2256_v53, %v2224_v24  ;;  %v1024_v31 = vmin.f32 %v970_v47, 6.0  ;;  %v1776_v62 = vmul.f32 %v4201_v32, %v4083_v42  ;;  %v1848_v11 = vmul.f32 %v4208_v22, %v4093_v12  ;;  %v4267_v47 = vld [vmem:[#allocation2 + $0xe0] sm:$0xff] }
 0x160   : > { %v1017_v25 = vmin.f32 %v963_v46, 6.0  ;;  %v1016_v18 = vmin.f32 %v962_v57, 6.0  ;;  %v1921_v20 = vmul.f32 %v4215_v51, %v4182_v0  ;;  %v1993_v48 = vmul.f32 %v3692_v49, %v4184_v2  ;;  %v4231_v49 = vld [vmem:[#allocation2 + $0xd9] sm:$0xff]  ;;  %v4271_v46 = vld [vmem:[#allocation2 + $0xe2] sm:$0xff] }
 0x161   : > { %v2320_v40 = vadd.f32 %v2288_v33, %v2064_v8  ;;  %v1376_v59 = vsel %vm1163_vm4, %v1024_v31, 0.0  ;;  %v2065_v37 = vmul.f32 %v3703_v55, %v4195_v4  ;;  %v2097_v52 = vadd.f32 %v1559_v10, %v1487_v30  ;;  %v4269_v10 = vld [vmem:[#allocation2 + $0xe1] sm:$0xff]  ;;  %v3243_v31 = vpop.f32.mrb[8].mxu1 }
 0x162   : > { %1431 = vst.msk [vmem:[#allocation2 + $0x190] sm:$0xff] %vm1380_vm2, %v1376_v59  ;;  %1424 = vst.msk [vmem:[#allocation2 + $0x158] sm:$0xff] %vm1380_vm2, %v1017_v25  ;;  %v1368_v7 = vsel %vm1104_vm3, %v1016_v18, 0.0  ;;  %v2129_v13 = vadd.f32 %v1704_v26, %v1631_v27  ;;  %v2161_v16 = vadd.f32 %v1848_v11, %v1776_v62  ;;  %v2193_v45 = vadd.f32 %v1993_v48, %v1921_v20  ;;  %v911_v18 = vpop.f32.mrb[9].mxu1 }
 0x163   : > { %v2359_v6 = vadd.f32 %v3765_v17, %v2320_v40  ;;  %1423 = vst.msk [vmem:[#allocation2 + $0x150] sm:$0xff] %vm1380_vm2, %v1368_v7  ;;  %v1488_v55 = vmul.f32 %v4126_v23, %v4046_v29  ;;  %v1560_v41 = vmul.f32 %v4133_v35, %v4054_v15  ;;  %v1632_v1 = vmul.f32 %v4140_v3, %v4056_v43  ;;  %v4254_v43 = vld [vmem:[%s4831_s3 + $0x7] ss:$0 sm:$0xff] }
 0x164   : > { %v2225_v50 = vadd.f32 %v2129_v13, %v2097_v52  ;;  %v2257_v60 = vadd.f32 %v2193_v45, %v2161_v16  ;;  %v1705_v8 = vmul.f32 %v4191_v38, %v4144_v14  ;;  %v1777_v63 = vmul.f32 %v4201_v32, %v4146_v9 }
 0x165   : > { %v2391_v58 = vmax.f32 %v2359_v6, 0.0  ;;  %v1849_v29 = vmul.f32 %v4208_v22, %v4153_v36  ;;  %v1922_v15 = vmul.f32 %v4215_v51, %v4229_v61  ;;  %v1994_v34 = vmul.f32 %v4254_v43, %v4231_v49  ;;  %v4295_v6 = vld [vmem:[#allocation2 + $0xf0] sm:$0xff] }
 0x166   : > { %v2289_v21 = vadd.f32 %v2257_v60, %v2225_v50  ;;  %v2066_v39 = vmul.f32 %v4261_v44, %v4241_v19  ;;  %v2098_v24 = vadd.f32 %v1560_v41, %v1488_v55  ;;  %v2130_v28 = vadd.f32 %v1705_v8, %v1632_v1  ;;  %v4297_v55 = vld [vmem:[#allocation2 + $0xf1] sm:$0xff] }
 0x167   : > { %v2423_v56 = vmin.f32 %v2391_v58, 6.0  ;;  %v2162_v30 = vadd.f32 %v1849_v29, %v1777_v63  ;;  %v2194_v5 = vadd.f32 %v1994_v34, %v1922_v15  ;;  %v1489_v53 = vmul.f32 %v4126_v23, %v4081_v54  ;;  %v4299_v41 = vld [vmem:[#allocation2 + $0xf2] sm:$0xff] }
 0x168   : > { %v2321_v57 = vadd.f32 %v2289_v21, %v2065_v37  ;;  %v2226_v27 = vadd.f32 %v2130_v28, %v2098_v24  ;;  %v1561_v26 = vmul.f32 %v4133_v35, %v4083_v42  ;;  %v1633_v33 = vmul.f32 %v4140_v3, %v4093_v12 }
 0x169   : > { %3268 = vmatprep.mubr.msk.f32.mxu1 %vm1380_vm2, %v2423_v56  ;;  %v2258_v62 = vadd.f32 %v2194_v5, %v2162_v30  ;;  %v1706_v54 = vmul.f32 %v4191_v38, %v4182_v0  ;;  %v1778_v11 = vmul.f32 %v4201_v32, %v4184_v2  ;;  %v1850_v25 = vmul.f32 %v4208_v22, %v4195_v4 }
 0x16a   : > { %v2360_v20 = vadd.f32 %v3765_v17, %v2321_v57  ;;  %v1923_v42 = vmul.f32 %v4215_v51, %v4267_v47  ;;  %v1995_v12 = vmul.f32 %v4254_v43, %v4269_v10  ;;  %v2067_v48 = vmul.f32 %v4261_v44, %v4271_v46  ;;  %v4323_v57 = vld [vmem:[#allocation2 + $0xf9] sm:$0xff] }
 0x16b   : > { %v2290_v40 = vadd.f32 %v2258_v62, %v2226_v27  ;;  %v2099_v59 = vadd.f32 %v1561_v26, %v1489_v53  ;;  %v2131_v37 = vadd.f32 %v1706_v54, %v1633_v33  ;;  %v2163_v52 = vadd.f32 %v1850_v25, %v1778_v11  ;;  %v4321_v53 = vld [vmem:[#allocation2 + $0xf8] sm:$0xff]  ;;  %v4338_v25 = vld [vmem:[%s4832_s4] ss:$0 sm:$0xff] }
 0x16c   : > { %v2392_v7 = vmax.f32 %v2360_v20, 0.0  ;;  %v2195_v13 = vadd.f32 %v1995_v12, %v1923_v42  ;;  %v1490_v16 = vmul.f32 %v4126_v23, %v4144_v14  ;;  %v1562_v45 = vmul.f32 %v4133_v35, %v4146_v9  ;;  %v4325_v27 = vld [vmem:[#allocation2 + $0xfa] sm:$0xff] }
 0x16d   : > { %v2322_v1 = vadd.f32 %v2290_v40, %v2066_v39  ;;  %v2227_v50 = vadd.f32 %v2131_v37, %v2099_v59  ;;  %v1634_v60 = vmul.f32 %v4140_v3, %v4153_v36  ;;  %v1707_v8 = vmul.f32 %v4191_v38, %v4229_v61 }
 0x16e   : > { %v2424_v63 = vmin.f32 %v2392_v7, 6.0  ;;  %v2259_v58 = vadd.f32 %v2195_v13, %v2163_v52  ;;  %v1779_v14 = vmul.f32 %v4201_v32, %v4231_v49  ;;  %v1851_v9 = vmul.f32 %v4208_v22, %v4241_v19 }
 0x16f   : > { %v2361_v29 = vadd.f32 %v3765_v17, %v2322_v1  ;;  %v1924_v15 = vmul.f32 %v4215_v51, %v4295_v6  ;;  %v1996_v34 = vmul.f32 %v4254_v43, %v4297_v55  ;;  %v2068_v36 = vmul.f32 %v4261_v44, %v4299_v41  ;;  %v4356_v1 = vld [vmem:[#allocation2 + $0x10a] sm:$0xff] }
 0x170   : > { %3269 = vmatmul.mubr.msk.f32.gmra.mrb[22].mxu1 %vm1380_vm2, %v2424_v63  ;;  %v2291_v21 = vadd.f32 %v2259_v58, %v2227_v50  ;;  %v2100_v39 = vadd.f32 %v1562_v45, %v1490_v16  ;;  %v2132_v24 = vadd.f32 %v1707_v8, %v1634_v60  ;;  %v2164_v28 = vadd.f32 %v1851_v9, %v1779_v14  ;;  %v4352_v16 = vld [vmem:[#allocation2 + $0x108] sm:$0xff] }
 0x171   : > { %v2393_v56 = vmax.f32 %v2361_v29, 0.0  ;;  %v2196_v30 = vadd.f32 %v1996_v34, %v1924_v15  ;;  %v1491_v17 = vmul.f32 %v4126_v23, %v4182_v0  ;;  %v1563_v5 = vmul.f32 %v4133_v35, %v4184_v2  ;;  %v4354_v45 = vld [vmem:[#allocation2 + $0x109] sm:$0xff] }
 0x172   : > { %v2323_v26 = vadd.f32 %v2291_v21, %v2067_v48  ;;  %v2228_v33 = vadd.f32 %v2132_v24, %v2100_v39  ;;  %v1635_v31 = vmul.f32 %v4140_v3, %v4195_v4  ;;  %v1708_v62 = vmul.f32 %v4191_v38, %v4267_v47 }
 0x173   : > { %v2425_v54 = vmin.f32 %v2393_v56, 6.0  ;;  %v2260_v11 = vadd.f32 %v2196_v30, %v2164_v28  ;;  %v1780_v0 = vmul.f32 %v4201_v32, %v4269_v10  ;;  %v1852_v2 = vmul.f32 %v4208_v22, %v4271_v46 }
 0x174   : > { %v2362_v18 = vadd.f32 %v4338_v25, %v2323_v26  ;;  %v1925_v4 = vmul.f32 %v4215_v51, %v4321_v53  ;;  %v1997_v20 = vmul.f32 %v4254_v43, %v4323_v57  ;;  %v2069_v42 = vmul.f32 %v4261_v44, %v4325_v27  ;;  %v4382_v26 = vld [vmem:[#allocation2 + $0x112] sm:$0xff] }
 0x175   : > { %3271 = vmatprep.mubr.msk.f32.mxu1 %vm1380_vm2, %v2425_v54  ;;  %v2292_v12 = vadd.f32 %v2260_v11, %v2228_v33  ;;  %v2101_v48 = vadd.f32 %v1563_v5, %v1491_v17  ;;  %v2133_v40 = vadd.f32 %v1708_v62, %v1635_v31  ;;  %v2165_v59 = vadd.f32 %v1852_v2, %v1780_v0  ;;  %v4378_v17 = vld [vmem:[#allocation2 + $0x110] sm:$0xff] }
 0x176   : > { %v2394_v37 = vmax.f32 %v2362_v18, 0.0  ;;  %v2197_v52 = vadd.f32 %v1997_v20, %v1925_v4  ;;  %v1492_v7 = vmul.f32 %v4126_v23, %v4229_v61  ;;  %v1564_v13 = vmul.f32 %v4133_v35, %v4231_v49  ;;  %v4380_v5 = vld [vmem:[#allocation2 + $0x111] sm:$0xff] }
 0x177   : > { %v2324_v50 = vadd.f32 %v2292_v12, %v2068_v36  ;;  %v2229_v60 = vadd.f32 %v2133_v40, %v2101_v48  ;;  %v1636_v8 = vmul.f32 %v4140_v3, %v4241_v19  ;;  %v1709_v63 = vmul.f32 %v4191_v38, %v4295_v6 }
 0x178   : > { %v2426_v58 = vmin.f32 %v2394_v37, 6.0  ;;  %v2261_v14 = vadd.f32 %v2197_v52, %v2165_v59  ;;  %v1781_v61 = vmul.f32 %v4201_v32, %v4297_v55  ;;  %v1853_v49 = vmul.f32 %v4208_v22, %v4299_v41 }
 0x179   : > { %v2363_v9 = vadd.f32 %v4338_v25, %v2324_v50  ;;  %v1926_v29 = vmul.f32 %v4215_v51, %v4352_v16  ;;  %v1998_v15 = vmul.f32 %v4254_v43, %v4354_v45  ;;  %v2070_v19 = vmul.f32 %v4261_v44, %v4356_v1  ;;  %v4408_v50 = vld [vmem:[#allocation2 + $0x122] sm:$0xff] }
 0x17a   : > { %3272 = vmatmul.mubr.msk.f32.gmra.mrb[24].mxu1 %vm1380_vm2, %v2426_v58  ;;  %v2293_v34 = vadd.f32 %v2261_v14, %v2229_v60  ;;  %v2102_v36 = vadd.f32 %v1564_v13, %v1492_v7  ;;  %v2134_v21 = vadd.f32 %v1709_v63, %v1636_v8  ;;  %v2166_v39 = vadd.f32 %v1853_v49, %v1781_v61  ;;  %v4404_v7 = vld [vmem:[#allocation2 + $0x120] sm:$0xff] }
 0x17b   : > { %v2395_v24 = vmax.f32 %v2363_v9, 0.0  ;;  %v2198_v28 = vadd.f32 %v1998_v15, %v1926_v29  ;;  %v1493_v56 = vmul.f32 %v4126_v23, %v4267_v47  ;;  %v1565_v30 = vmul.f32 %v4133_v35, %v4269_v10  ;;  %v4406_v13 = vld [vmem:[#allocation2 + $0x121] sm:$0xff] }
 0x17c   : > { %v2325_v33 = vadd.f32 %v2293_v34, %v2069_v42  ;;  %v2230_v31 = vadd.f32 %v2134_v21, %v2102_v36  ;;  %v1637_v62 = vmul.f32 %v4140_v3, %v4271_v46  ;;  %v1710_v54 = vmul.f32 %v4191_v38, %v4321_v53 }
 0x17d   : > { %v2427_v11 = vmin.f32 %v2395_v24, 6.0  ;;  %v2262_v0 = vadd.f32 %v2198_v28, %v2166_v39  ;;  %v1782_v47 = vmul.f32 %v4201_v32, %v4323_v57  ;;  %v1854_v10 = vmul.f32 %v4208_v22, %v4325_v27 }
 0x17e   : > { %v2364_v2 = vadd.f32 %v4338_v25, %v2325_v33  ;;  %v1927_v18 = vmul.f32 %v4215_v51, %v4378_v17  ;;  %v1999_v4 = vmul.f32 %v4254_v43, %v4380_v5  ;;  %v2071_v46 = vmul.f32 %v4261_v44, %v4382_v26  ;;  %v4434_v33 = vld [vmem:[#allocation2 + $0x12a] sm:$0xff] }
 0x17f   : > { %3274 = vmatprep.mubr.msk.f32.mxu1 %vm1380_vm2, %v2427_v11  ;;  %v2294_v20 = vadd.f32 %v2262_v0, %v2230_v31  ;;  %v2103_v42 = vadd.f32 %v1565_v30, %v1493_v56  ;;  %v2135_v12 = vadd.f32 %v1710_v54, %v1637_v62  ;;  %v2167_v48 = vadd.f32 %v1854_v10, %v1782_v47  ;;  %v4430_v56 = vld [vmem:[#allocation2 + $0x128] sm:$0xff] }
 0x180   : > { %v2396_v40 = vmax.f32 %v2364_v2, 0.0  ;;  %v2199_v59 = vadd.f32 %v1999_v4, %v1927_v18  ;;  %v1494_v37 = vmul.f32 %v4126_v23, %v4295_v6  ;;  %v1566_v52 = vmul.f32 %v4133_v35, %v4297_v55  ;;  %v4432_v30 = vld [vmem:[#allocation2 + $0x129] sm:$0xff] }
 0x181   : > { %v2326_v60 = vadd.f32 %v2294_v20, %v2070_v19  ;;  %v2231_v8 = vadd.f32 %v2135_v12, %v2103_v42  ;;  %v1638_v63 = vmul.f32 %v4140_v3, %v4299_v41  ;;  %v1711_v58 = vmul.f32 %v4191_v38, %v4352_v16 }
 0x182   : > { %v2428_v14 = vmin.f32 %v2396_v40, 6.0  ;;  %v2263_v61 = vadd.f32 %v2199_v59, %v2167_v48  ;;  %v1783_v6 = vmul.f32 %v4201_v32, %v4354_v45  ;;  %v1855_v55 = vmul.f32 %v4208_v22, %v4356_v1 }
 0x183   : > { %v2365_v49 = vadd.f32 %v4338_v25, %v2326_v60  ;;  %v1928_v9 = vmul.f32 %v4215_v51, %v4404_v7  ;;  %v2000_v29 = vmul.f32 %v4254_v43, %v4406_v13  ;;  %v2072_v41 = vmul.f32 %v4261_v44, %v4408_v50  ;;  %v4460_v60 = vld [vmem:[#allocation2 + $0x13a] sm:$0xff] }
 0x184   : > { %3275 = vmatmul.mubr.msk.f32.gmra.mrb[26].mxu1 %vm1380_vm2, %v2428_v14  ;;  %v2295_v15 = vadd.f32 %v2263_v61, %v2231_v8  ;;  %v2104_v19 = vadd.f32 %v1566_v52, %v1494_v37  ;;  %v2136_v34 = vadd.f32 %v1711_v58, %v1638_v63  ;;  %v2168_v36 = vadd.f32 %v1855_v55, %v1783_v6  ;;  %v4456_v37 = vld [vmem:[#allocation2 + $0x138] sm:$0xff] }
 0x185   : > { %v2397_v21 = vmax.f32 %v2365_v49, 0.0  ;;  %v2200_v39 = vadd.f32 %v2000_v29, %v1928_v9  ;;  %v1495_v24 = vmul.f32 %v4126_v23, %v4321_v53  ;;  %v1567_v28 = vmul.f32 %v4133_v35, %v4323_v57  ;;  %v4458_v52 = vld [vmem:[#allocation2 + $0x139] sm:$0xff] }
 0x186   : > { %v2327_v31 = vadd.f32 %v2295_v15, %v2071_v46  ;;  %v2232_v62 = vadd.f32 %v2136_v34, %v2104_v19  ;;  %v1639_v54 = vmul.f32 %v4140_v3, %v4325_v27  ;;  %v1712_v11 = vmul.f32 %v4191_v38, %v4378_v17 }
 0x187   : > { %v2429_v0 = vmin.f32 %v2397_v21, 6.0  ;;  %v2264_v47 = vadd.f32 %v2200_v39, %v2168_v36  ;;  %v1784_v53 = vmul.f32 %v4201_v32, %v4380_v5  ;;  %v1856_v57 = vmul.f32 %v4208_v22, %v4382_v26 }
 0x188   : > { %v2366_v10 = vadd.f32 %v4338_v25, %v2327_v31  ;;  %v1929_v2 = vmul.f32 %v4215_v51, %v4430_v56  ;;  %v2001_v18 = vmul.f32 %v4254_v43, %v4432_v30  ;;  %v2073_v27 = vmul.f32 %v4261_v44, %v4434_v33  ;;  %v4486_v31 = vld [vmem:[#allocation2 + $0x142] sm:$0xff] }
 0x189   : > { %3277 = vmatprep.mubr.msk.f32.mxu1 %vm1380_vm2, %v2429_v0  ;;  %v2296_v4 = vadd.f32 %v2264_v47, %v2232_v62  ;;  %v2105_v46 = vadd.f32 %v1567_v28, %v1495_v24  ;;  %v2137_v20 = vadd.f32 %v1712_v11, %v1639_v54  ;;  %v2169_v42 = vadd.f32 %v1856_v57, %v1784_v53  ;;  %v4482_v24 = vld [vmem:[#allocation2 + $0x140] sm:$0xff] }
 0x18a   : > { %v2398_v12 = vmax.f32 %v2366_v10, 0.0  ;;  %v2201_v48 = vadd.f32 %v2001_v18, %v1929_v2  ;;  %v1496_v40 = vmul.f32 %v4126_v23, %v4352_v16  ;;  %v1568_v59 = vmul.f32 %v4133_v35, %v4354_v45  ;;  %v4484_v28 = vld [vmem:[#allocation2 + $0x141] sm:$0xff] }
 0x18b   : > { %v2328_v8 = vadd.f32 %v2296_v4, %v2072_v41  ;;  %v2233_v63 = vadd.f32 %v2137_v20, %v2105_v46  ;;  %v1640_v58 = vmul.f32 %v4140_v3, %v4356_v1  ;;  %v1713_v14 = vmul.f32 %v4191_v38, %v4404_v7 }
 0x18c   : > { %v2430_v61 = vmin.f32 %v2398_v12, 6.0  ;;  %v2265_v6 = vadd.f32 %v2201_v48, %v2169_v42  ;;  %v1785_v16 = vmul.f32 %v4201_v32, %v4406_v13  ;;  %v1857_v45 = vmul.f32 %v4208_v22, %v4408_v50 }
 0x18d   : > { %v2367_v55 = vadd.f32 %v4338_v25, %v2328_v8  ;;  %v1930_v49 = vmul.f32 %v4215_v51, %v4456_v37  ;;  %v2002_v9 = vmul.f32 %v4254_v43, %v4458_v52  ;;  %v2074_v1 = vmul.f32 %v4261_v44, %v4460_v60  ;;  %v4512_v8 = vld [vmem:[#allocation2 + $0x152] sm:$0xff] }
 0x18e   : > { %3278 = vmatmul.mubr.msk.f32.gmra.mrb[28].mxu1 %vm1380_vm2, %v2430_v61  ;;  %v2297_v29 = vadd.f32 %v2265_v6, %v2233_v63  ;;  %v2106_v41 = vadd.f32 %v1568_v59, %v1496_v40  ;;  %v2138_v15 = vadd.f32 %v1713_v14, %v1640_v58  ;;  %v2170_v19 = vadd.f32 %v1857_v45, %v1785_v16  ;;  %v4508_v40 = vld [vmem:[#allocation2 + $0x150] sm:$0xff] }
 0x18f   : > { %v2399_v34 = vmax.f32 %v2367_v55, 0.0  ;;  %v2202_v36 = vadd.f32 %v2002_v9, %v1930_v49  ;;  %v1497_v21 = vmul.f32 %v4126_v23, %v4378_v17  ;;  %v1569_v39 = vmul.f32 %v4133_v35, %v4380_v5  ;;  %v4510_v59 = vld [vmem:[#allocation2 + $0x151] sm:$0xff] }
 0x190   : > { %v2329_v62 = vadd.f32 %v2297_v29, %v2073_v27  ;;  %v2234_v54 = vadd.f32 %v2138_v15, %v2106_v41  ;;  %v1641_v11 = vmul.f32 %v4140_v3, %v4382_v26  ;;  %v1714_v0 = vmul.f32 %v4191_v38, %v4430_v56 }
 0x191   : > { %v2431_v47 = vmin.f32 %v2399_v34, 6.0  ;;  %v2266_v53 = vadd.f32 %v2202_v36, %v2170_v19  ;;  %v1786_v17 = vmul.f32 %v4201_v32, %v4432_v30  ;;  %v1858_v5 = vmul.f32 %v4208_v22, %v4434_v33 }
 0x192   : > { %v2368_v57 = vadd.f32 %v4338_v25, %v2329_v62  ;;  %v1931_v10 = vmul.f32 %v4215_v51, %v4482_v24  ;;  %v2003_v2 = vmul.f32 %v4254_v43, %v4484_v28  ;;  %v2075_v26 = vmul.f32 %v4261_v44, %v4486_v31  ;;  %v4538_v62 = vld [vmem:[#allocation2 + $0x15a] sm:$0xff] }
 0x193   : > { %3280 = vmatprep.mubr.msk.f32.mxu1 %vm1380_vm2, %v2431_v47  ;;  %v2298_v18 = vadd.f32 %v2266_v53, %v2234_v54  ;;  %v2107_v27 = vadd.f32 %v1569_v39, %v1497_v21  ;;  %v2139_v4 = vadd.f32 %v1714_v0, %v1641_v11  ;;  %v2171_v46 = vadd.f32 %v1858_v5, %v1786_v17  ;;  %v4534_v21 = vld [vmem:[#allocation2 + $0x158] sm:$0xff] }
 0x194   : > { %v2400_v20 = vmax.f32 %v2368_v57, 0.0  ;;  %v2203_v42 = vadd.f32 %v2003_v2, %v1931_v10  ;;  %v1498_v12 = vmul.f32 %v4126_v23, %v4404_v7  ;;  %v1570_v48 = vmul.f32 %v4133_v35, %v4406_v13  ;;  %v4536_v39 = vld [vmem:[#allocation2 + $0x159] sm:$0xff] }
 0x195   : > { %v2330_v63 = vadd.f32 %v2298_v18, %v2074_v1  ;;  %v2235_v58 = vadd.f32 %v2139_v4, %v2107_v27  ;;  %v1642_v14 = vmul.f32 %v4140_v3, %v4408_v50  ;;  %v1715_v61 = vmul.f32 %v4191_v38, %v4456_v37 }
 0x196   : > { %v2432_v6 = vmin.f32 %v2400_v20, 6.0  ;;  %v2267_v16 = vadd.f32 %v2203_v42, %v2171_v46  ;;  %v1787_v7 = vmul.f32 %v4201_v32, %v4458_v52  ;;  %v1859_v13 = vmul.f32 %v4208_v22, %v4460_v60 }
 0x197   : > { %v2369_v45 = vadd.f32 %v4338_v25, %v2330_v63  ;;  %v1932_v55 = vmul.f32 %v4215_v51, %v4508_v40  ;;  %v2004_v49 = vmul.f32 %v4254_v43, %v4510_v59  ;;  %v2076_v50 = vmul.f32 %v4261_v44, %v4512_v8  ;;  %v4564_v63 = vld [vmem:[#allocation2 + $0x16a] sm:$0xff] }
 0x198   : > { %3281 = vmatmul.mubr.msk.f32.gmra.mrb[30].mxu1 %vm1380_vm2, %v2432_v6  ;;  %v2299_v9 = vadd.f32 %v2267_v16, %v2235_v58  ;;  %v2108_v1 = vadd.f32 %v1570_v48, %v1498_v12  ;;  %v2140_v29 = vadd.f32 %v1715_v61, %v1642_v14  ;;  %v2172_v41 = vadd.f32 %v1859_v13, %v1787_v7  ;;  %v4560_v12 = vld [vmem:[#allocation2 + $0x168] sm:$0xff] }
 0x199   : > { %v2401_v15 = vmax.f32 %v2369_v45, 0.0  ;;  %v2204_v19 = vadd.f32 %v2004_v49, %v1932_v55  ;;  %v1499_v34 = vmul.f32 %v4126_v23, %v4430_v56  ;;  %v1571_v36 = vmul.f32 %v4133_v35, %v4432_v30  ;;  %v4562_v48 = vld [vmem:[#allocation2 + $0x169] sm:$0xff] }
 0x19a   : > { %v2331_v54 = vadd.f32 %v2299_v9, %v2075_v26  ;;  %v2236_v11 = vadd.f32 %v2140_v29, %v2108_v1  ;;  %v1643_v0 = vmul.f32 %v4140_v3, %v4434_v33  ;;  %v1716_v47 = vmul.f32 %v4191_v38, %v4482_v24 }
 0x19b   : > { %v2433_v53 = vmin.f32 %v2401_v15, 6.0  ;;  %v2268_v17 = vadd.f32 %v2204_v19, %v2172_v41  ;;  %v1788_v56 = vmul.f32 %v4201_v32, %v4484_v28  ;;  %v1860_v30 = vmul.f32 %v4208_v22, %v4486_v31 }
 0x19c   : > { %v2370_v5 = vadd.f32 %v4338_v25, %v2331_v54  ;;  %v1933_v57 = vmul.f32 %v4215_v51, %v4534_v21  ;;  %v2005_v10 = vmul.f32 %v4254_v43, %v4536_v39  ;;  %v2077_v33 = vmul.f32 %v4261_v44, %v4538_v62  ;;  %v4590_v54 = vld [vmem:[#allocation2 + $0x172] sm:$0xff] }
 0x19d   : > { %3283 = vmatprep.mubr.msk.f32.mxu1 %vm1380_vm2, %v2433_v53  ;;  %v2300_v2 = vadd.f32 %v2268_v17, %v2236_v11  ;;  %v2109_v26 = vadd.f32 %v1571_v36, %v1499_v34  ;;  %v2141_v18 = vadd.f32 %v1716_v47, %v1643_v0  ;;  %v2173_v27 = vadd.f32 %v1860_v30, %v1788_v56  ;;  %v4586_v34 = vld [vmem:[#allocation2 + $0x170] sm:$0xff] }
 0x19e   : > { %v2402_v4 = vmax.f32 %v2370_v5, 0.0  ;;  %v2205_v46 = vadd.f32 %v2005_v10, %v1933_v57  ;;  %v1500_v20 = vmul.f32 %v4126_v23, %v4456_v37  ;;  %v1572_v42 = vmul.f32 %v4133_v35, %v4458_v52  ;;  %v4588_v36 = vld [vmem:[#allocation2 + $0x171] sm:$0xff] }
 0x19f   : > { %v2332_v58 = vadd.f32 %v2300_v2, %v2076_v50  ;;  %v2237_v14 = vadd.f32 %v2141_v18, %v2109_v26  ;;  %v1644_v61 = vmul.f32 %v4140_v3, %v4460_v60  ;;  %v1717_v6 = vmul.f32 %v4191_v38, %v4508_v40 }
 0x1a0   : > { %v2434_v16 = vmin.f32 %v2402_v4, 6.0  ;;  %v2269_v7 = vadd.f32 %v2205_v46, %v2173_v27  ;;  %v1789_v37 = vmul.f32 %v4201_v32, %v4510_v59  ;;  %v1861_v52 = vmul.f32 %v4208_v22, %v4512_v8 }
 0x1a1   : > { %v2371_v13 = vadd.f32 %v4338_v25, %v2332_v58  ;;  %v1934_v45 = vmul.f32 %v4215_v51, %v4560_v12  ;;  %v2006_v55 = vmul.f32 %v4254_v43, %v4562_v48  ;;  %v2078_v60 = vmul.f32 %v4261_v44, %v4564_v63 }
 0x1a2   : > { %3284 = vmatmul.mubr.msk.f32.gmra.mrb[32].mxu1 %vm1380_vm2, %v2434_v16  ;;  %v2301_v49 = vadd.f32 %v2269_v7, %v2237_v14  ;;  %v2110_v50 = vadd.f32 %v1572_v42, %v1500_v20  ;;  %v2142_v9 = vadd.f32 %v1717_v6, %v1644_v61  ;;  %v2174_v1 = vadd.f32 %v1861_v52, %v1789_v37  ;;  %v1896_v20 = vld [vmem:[#allocation2 + $0x180] sm:$0xff] }
 0x1a3   : > { %v2403_v29 = vmax.f32 %v2371_v13, 0.0  ;;  %v2206_v41 = vadd.f32 %v2006_v55, %v1934_v45  ;;  %v1501_v15 = vmul.f32 %v4126_v23, %v4482_v24  ;;  %v1573_v19 = vmul.f32 %v4133_v35, %v4484_v28  ;;  %v1968_v42 = vld [vmem:[#allocation2 + $0x181] sm:$0xff] }
 0x1a4   : > { %v2333_v11 = vadd.f32 %v2301_v49, %v2077_v33  ;;  %v2238_v0 = vadd.f32 %v2142_v9, %v2110_v50  ;;  %v1645_v47 = vmul.f32 %v4140_v3, %v4486_v31  ;;  %v1718_v53 = vmul.f32 %v4191_v38, %v4534_v21  ;;  %v2040_v52 = vld [vmem:[#allocation2 + $0x182] sm:$0xff] }
 0x1a5   : > { %v2435_v17 = vmin.f32 %v2403_v29, 6.0  ;;  %v2270_v56 = vadd.f32 %v2206_v41, %v2174_v1  ;;  %v1790_v24 = vmul.f32 %v4201_v32, %v4536_v39  ;;  %v1862_v28 = vmul.f32 %v4208_v22, %v4538_v62 }
 0x1a6   : > { %v2372_v30 = vadd.f32 %v4338_v25, %v2333_v11  ;;  %v1935_v5 = vmul.f32 %v4215_v51, %v4586_v34  ;;  %v2007_v57 = vmul.f32 %v4254_v43, %v4588_v36  ;;  %v2079_v31 = vmul.f32 %v4261_v44, %v4590_v54 }
 0x1a7   : > { %3286 = vmatprep.mubr.msk.f32.mxu1 %vm1380_vm2, %v2435_v17  ;;  %v2302_v10 = vadd.f32 %v2270_v56, %v2238_v0  ;;  %v2111_v33 = vadd.f32 %v1573_v19, %v1501_v15  ;;  %v2143_v2 = vadd.f32 %v1718_v53, %v1645_v47  ;;  %v2175_v26 = vadd.f32 %v1862_v28, %v1790_v24  ;;  %v1897_v15 = vld [vmem:[#allocation2 + $0x188] sm:$0xff] }
 0x1a8   : > { %v2404_v18 = vmax.f32 %v2372_v30, 0.0  ;;  %v2207_v27 = vadd.f32 %v2007_v57, %v1935_v5  ;;  %v1502_v4 = vmul.f32 %v4126_v23, %v4508_v40  ;;  %v1574_v46 = vmul.f32 %v4133_v35, %v4510_v59  ;;  %v1969_v19 = vld [vmem:[#allocation2 + $0x189] sm:$0xff] }
 0x1a9   : > { %v2334_v58 = vadd.f32 %v2302_v10, %v2078_v60  ;;  %v2239_v14 = vadd.f32 %v2143_v2, %v2111_v33  ;;  %v1646_v61 = vmul.f32 %v4140_v3, %v4512_v8  ;;  %v1719_v6 = vmul.f32 %v4191_v38, %v4560_v12  ;;  %v2041_v28 = vld [vmem:[#allocation2 + $0x18a] sm:$0xff] }
 0x1aa   : > { %v2436_v16 = vmin.f32 %v2404_v18, 6.0  ;;  %v2271_v7 = vadd.f32 %v2207_v27, %v2175_v26  ;;  %v1791_v37 = vmul.f32 %v4201_v32, %v4562_v48  ;;  %v1863_v40 = vmul.f32 %v4208_v22, %v4564_v63 }
 0x1ab   : > { %v2373_v59 = vadd.f32 %v4338_v25, %v2334_v58  ;;  %v1936_v13 = vmul.f32 %v4215_v51, %v1896_v20  ;;  %v2008_v45 = vmul.f32 %v4254_v43, %v1968_v42  ;;  %v2080_v8 = vmul.f32 %v4261_v44, %v2040_v52  ;;  %v2042_v58 = vld [vmem:[#allocation2 + $0x19a] sm:$0xff] }
 0x1ac   : > { %3287 = vmatmul.mubr.msk.f32.gmra.mrb[34].mxu1 %vm1380_vm2, %v2436_v16  ;;  %v2303_v55 = vadd.f32 %v2271_v7, %v2239_v14  ;;  %v2112_v60 = vadd.f32 %v1574_v46, %v1502_v4  ;;  %v2144_v49 = vadd.f32 %v1719_v6, %v1646_v61  ;;  %v2176_v50 = vadd.f32 %v1863_v40, %v1791_v37  ;;  %v1898_v4 = vld [vmem:[#allocation2 + $0x198] sm:$0xff] }
 0x1ad   : > { %v2405_v9 = vmax.f32 %v2373_v59, 0.0  ;;  %v2208_v1 = vadd.f32 %v2008_v45, %v1936_v13  ;;  %v1503_v29 = vmul.f32 %v4126_v23, %v4534_v21  ;;  %v1575_v41 = vmul.f32 %v4133_v35, %v4536_v39  ;;  %v1970_v46 = vld [vmem:[#allocation2 + $0x199] sm:$0xff] }
 0x1ae   : > { %v2335_v11 = vadd.f32 %v2303_v55, %v2079_v31  ;;  %v2240_v0 = vadd.f32 %v2144_v49, %v2112_v60  ;;  %v1647_v47 = vmul.f32 %v4140_v3, %v4538_v62  ;;  %v1720_v53 = vmul.f32 %v4191_v38, %v4586_v34 }
 0x1af   : > { %v2437_v17 = vmin.f32 %v2405_v9, 6.0  ;;  %v2272_v56 = vadd.f32 %v2208_v1, %v2176_v50  ;;  %v1792_v24 = vmul.f32 %v4201_v32, %v4588_v36  ;;  %v1864_v21 = vmul.f32 %v4208_v22, %v4590_v54  ;;  %v1899_v50 = vld [vmem:[#allocation2 + $0x1a0] sm:$0xff] }
 0x1b0   : > { %v2374_v39 = vadd.f32 %v4338_v25, %v2335_v11  ;;  %v1937_v30 = vmul.f32 %v4215_v51, %v1897_v15  ;;  %v2009_v5 = vmul.f32 %v4254_v43, %v1969_v19  ;;  %v2081_v62 = vmul.f32 %v4261_v44, %v2041_v28  ;;  %v1971_v9 = vld [vmem:[#allocation2 + $0x1a1] sm:$0xff] }
 0x1b1   : > { %3289 = vmatprep.mubr.msk.f32.mxu1 %vm1380_vm2, %v2437_v17  ;;  %v2304_v57 = vadd.f32 %v2272_v56, %v2240_v0  ;;  %v2113_v31 = vadd.f32 %v1575_v41, %v1503_v29  ;;  %v2145_v10 = vadd.f32 %v1720_v53, %v1647_v47  ;;  %v2177_v33 = vadd.f32 %v1864_v21, %v1792_v24  ;;  %v2043_v56 = vld [vmem:[#allocation2 + $0x1a2] sm:$0xff] }
 0x1b2   : > { %v2406_v2 = vmax.f32 %v2374_v39, 0.0  ;;  %v2209_v26 = vadd.f32 %v2009_v5, %v1937_v30  ;;  %v1504_v18 = vmul.f32 %v4126_v23, %v4560_v12  ;;  %v1576_v27 = vmul.f32 %v4133_v35, %v4562_v48 }
 0x1b3   : > { %v2336_v14 = vadd.f32 %v2304_v57, %v2080_v8  ;;  %v2241_v61 = vadd.f32 %v2145_v10, %v2113_v31  ;;  %v1648_v6 = vmul.f32 %v4140_v3, %v4564_v63  ;;  %v1721_v16 = vmul.f32 %v4191_v38, %v1896_v20  ;;  %v2775_v10 = vld [vmem:[%s4679_s16 + $0x8] sm:$0xff] }
 0x1b4   : > { %v2438_v7 = vmin.f32 %v2406_v2, 6.0  ;;  %v2273_v37 = vadd.f32 %v2209_v26, %v2177_v33  ;;  %v1793_v40 = vmul.f32 %v4201_v32, %v1968_v42  ;;  %v1865_v59 = vmul.f32 %v4208_v22, %v2040_v52  ;;  %v2774_v26 = vld [vmem:[%s4679_s16] sm:$0xff] }
 0x1b5   : > { %v2375_v12 = vadd.f32 %v4338_v25, %v2336_v14  ;;  %v1938_v48 = vmul.f32 %v4215_v51, %v1898_v4  ;;  %v2010_v13 = vmul.f32 %v4254_v43, %v1970_v46  ;;  %v2082_v45 = vmul.f32 %v4261_v44, %v2042_v58  ;;  %v2777_v58 = vld [vmem:[%s4679_s16 + $0x18] sm:$0xff] }
 0x1b6   : > { %3290 = vmatmul.mubr.msk.f32.gmra.mrb[36].mxu1 %vm1380_vm2, %v2438_v7  ;;  %v2305_v8 = vadd.f32 %v2273_v37, %v2241_v61  ;;  %v2114_v63 = vadd.f32 %v1576_v27, %v1504_v18  ;;  %v2146_v55 = vadd.f32 %v1721_v16, %v1648_v6  ;;  %v2178_v20 = vadd.f32 %v1865_v59, %v1793_v40  ;;  %v2776_v6 = vld [vmem:[%s4679_s16 + $0x10] sm:$0xff]  ;;  %v2779_v59 = vld [vmem:[%s4679_s16 + $0x28] sm:$0xff] }
 0x1b7   : > { %v2407_v60 = vmax.f32 %v2375_v12, 0.0  ;;  %v2210_v49 = vadd.f32 %v2010_v13, %v1938_v48  ;;  %v1505_v42 = vmul.f32 %v4126_v23, %v4586_v34  ;;  %v1577_v52 = vmul.f32 %v4133_v35, %v4588_v36  ;;  %v2778_v13 = vld [vmem:[%s4679_s16 + $0x20] sm:$0xff] }
 0x1b8   : > { %v2337_v1 = vadd.f32 %v2305_v8, %v2081_v62  ;;  %v2242_v29 = vadd.f32 %v2146_v55, %v2114_v63  ;;  %v1649_v41 = vmul.f32 %v4140_v3, %v4590_v54  ;;  %v1722_v11 = vmul.f32 %v4191_v38, %v1897_v15 }
 0x1b9   : > { %v2439_v0 = vmin.f32 %v2407_v60, 6.0  ;;  %v2274_v47 = vadd.f32 %v2210_v49, %v2178_v20  ;;  %v1794_v53 = vmul.f32 %v4201_v32, %v1969_v19  ;;  %v1866_v17 = vmul.f32 %v4208_v22, %v2041_v28  ;;  %v2781_v20 = vld [vmem:[%s4679_s16 + $0x38] sm:$0xff] }
 0x1ba   : > { %v2376_v23 = vadd.f32 %v4338_v25, %v2337_v1  ;;  %v1939_v34 = vmul.f32 %v4215_v51, %v1899_v50  ;;  %v2011_v35 = vmul.f32 %v4254_v43, %v1971_v9  ;;  %v2115_v24 = vadd.f32 %v1577_v52, %v1505_v42  ;;  %v2780_v42 = vld [vmem:[%s4679_s16 + $0x30] sm:$0xff] }
 0x1bb   : > { %3292 = vmatprep.mubr.msk.f32.mxu1 %vm1380_vm2, %v2439_v0  ;;  %v2306_v36 = vadd.f32 %v2274_v47, %v2242_v29  ;;  %v2147_v3 = vadd.f32 %v1722_v11, %v1649_v41  ;;  %v2179_v54 = vadd.f32 %v1866_v17, %v1794_v53  ;;  %v2083_v22 = vmul.f32 %v4261_v44, %v2043_v56  ;;  %v4684_v44 = vld [vmem:[%s4834_s6] ss:$0 sm:$0xff]  ;;  %v2783_v29 = vld [vmem:[%s4679_s16 + $0x48] sm:$0xff]  ;;  %v2784_v56 = vld [vmem:[%s4679_s16 + $0x50] sm:$0xff] }
 0x1bc   : > { %v2408_v38 = vmax.f32 %v2376_v23, 0.0  ;;  %v2211_v15 = vadd.f32 %v2011_v35, %v1939_v34  ;;  %v2782_v0 = vld [vmem:[%s4679_s16 + $0x40] sm:$0xff]  ;;  %v2785_v34 = vld [vmem:[%s4679_s16 + $0x58] sm:$0xff] }
 0x1bd   : > { %v2338_v21 = vadd.f32 %v2306_v36, %v2082_v45  ;;  %v2243_v32 = vadd.f32 %v2147_v3, %v2115_v24 }
 0x1be   : > { %v2440_v19 = vmin.f32 %v2408_v38, 6.0  ;;  %v2275_v28 = vadd.f32 %v2211_v15, %v2179_v54  ;;  %v2787_v15 = vld [vmem:[%s4679_s16 + $0x68] sm:$0xff] }
 0x1bf   : > { %v2377_v51 = vadd.f32 %v4338_v25, %v2338_v21 }
 0x1c0   : > { %3293 = vmatmul.mubr.msk.f32.gmra.mrb[38].mxu1 %vm1380_vm2, %v2440_v19  ;;  %v2307_v43 = vadd.f32 %v2275_v28, %v2243_v32  ;;  %v2786_v19 = vld [vmem:[%s4679_s16 + $0x60] sm:$0xff] }
 0x1c1   : > { %v2409_v39 = vmax.f32 %v2377_v51, 0.0 }
 0x1c2   : > { %v2339_v30 = vadd.f32 %v2307_v43, %v2083_v22 }
 0x1c3   : > { %v2441_v5 = vmin.f32 %v2409_v39, 6.0  ;;  %v2789_v39 = vld [vmem:[%s4679_s16 + $0x78] sm:$0xff] }
 0x1c4   : > { %v2378_v62 = vadd.f32 %v4338_v25, %v2339_v30 }
 0x1c5   : > { %3295 = vmatprep.mubr.msk.f32.mxu1 %vm1380_vm2, %v2441_v5 }
 0x1c6   : > { %v2410_v57 = vmax.f32 %v2378_v62, 0.0  ;;  %v2788_v62 = vld [vmem:[%s4679_s16 + $0x70] sm:$0xff] }
 0x1c8   : > { %v2442_v31 = vmin.f32 %v2410_v57, 6.0 }
 0x1ca   : > { %3296 = vmatmul.mubr.msk.f32.gmra.mrb[40].mxu1 %vm1380_vm2, %v2442_v31 }
 0x1ec   : > { %v3252_v25 = vpop.f32.mrb[10].mxu1 }
 0x1ed   : > { %v2621_v33 = vadd.f32 %v3252_v25, %v4684_v44  ;;  %v2615_v2 = vpop.f32.mrb[11].mxu1 }
 0x1ee   : > { %v2616_v18 = vadd.f32 %v4684_v44, %v2615_v2 }
 0x1ef   : > { %v2807_v27 = vadd.f32 %v2775_v10, %v2621_v33  ;;  %v2791_v33 = vld [vmem:[%s4679_s16 + $0x88] sm:$0xff] }
 0x1f0   : > { %v2806_v4 = vadd.f32 %v2774_v26, %v2616_v18  ;;  %v2790_v18 = vld [vmem:[%s4679_s16 + $0x80] sm:$0xff] }
 0x1f1   : > { %2839 = vst.msk [vmem:[%s4692_s20 + $0x8] sm:$0xff] %vm418_vm1, %v2807_v27 }
 0x1f2   : > { %2838 = vst.msk [vmem:[%s4692_s20] sm:$0xff] %vm418_vm1, %v2806_v4 }
 0x1fd   : > { %v3255_v46 = vpop.f32.mrb[12].mxu1 }
 0x1fe   : > { %v2631_v14 = vadd.f32 %v3255_v46, %v4684_v44  ;;  %v2625_v61 = vpop.f32.mrb[13].mxu1 }
 0x1ff   : > { %v2626_v16 = vadd.f32 %v4684_v44, %v2625_v61 }
 0x200   : > { %v2809_v7 = vadd.f32 %v2777_v58, %v2631_v14  ;;  %v2793_v14 = vld [vmem:[%s4679_s16 + $0x98] sm:$0xff] }
 0x201   : > { %v2808_v37 = vadd.f32 %v2776_v6, %v2626_v16  ;;  %v2792_v16 = vld [vmem:[%s4679_s16 + $0x90] sm:$0xff] }
 0x202   : > { %2841 = vst.msk [vmem:[%s4692_s20 + $0x18] sm:$0xff] %vm418_vm1, %v2809_v7 }
 0x203   : > { %2840 = vst.msk [vmem:[%s4692_s20 + $0x10] sm:$0xff] %vm418_vm1, %v2808_v37 }
 0x20d   : > { %v3258_v40 = vpop.f32.mrb[14].mxu1 }
 0x20e   : > { %v2641_v12 = vadd.f32 %v3258_v40, %v4684_v44  ;;  %v2635_v48 = vpop.f32.mrb[15].mxu1 }
 0x20f   : > { %v2636_v45 = vadd.f32 %v4684_v44, %v2635_v48 }
 0x210   : > { %v2811_v8 = vadd.f32 %v2779_v59, %v2641_v12  ;;  %v2795_v12 = vld [vmem:[%s4679_s16 + $0xa8] sm:$0xff] }
 0x211   : > { %v2810_v63 = vadd.f32 %v2778_v13, %v2636_v45  ;;  %v2794_v45 = vld [vmem:[%s4679_s16 + $0xa0] sm:$0xff] }
 0x212   : > { %2843 = vst.msk [vmem:[%s4692_s20 + $0x28] sm:$0xff] %vm418_vm1, %v2811_v8 }
 0x213   : > { %2842 = vst.msk [vmem:[%s4692_s20 + $0x20] sm:$0xff] %vm418_vm1, %v2810_v63 }
 0x218   : > { %v3261_v55 = vpop.f32.mrb[16].mxu1 }
 0x219   : > { %v2651_v60 = vadd.f32 %v3261_v55, %v4684_v44  ;;  %v2645_v49 = vpop.f32.mrb[17].mxu1 }
 0x21a   : > { %v2646_v52 = vadd.f32 %v4684_v44, %v2645_v49 }
 0x21b   : > { %v2813_v50 = vadd.f32 %v2781_v20, %v2651_v60  ;;  %v2797_v60 = vld [vmem:[%s4679_s16 + $0xb8] sm:$0xff] }
 0x21c   : > { %v2812_v9 = vadd.f32 %v2780_v42, %v2646_v52  ;;  %v2796_v52 = vld [vmem:[%s4679_s16 + $0xb0] sm:$0xff] }
 0x21d   : > { %2845 = vst.msk [vmem:[%s4692_s20 + $0x38] sm:$0xff] %vm418_vm1, %v2813_v50 }
 0x21e   : > { %2844 = vst.msk [vmem:[%s4692_s20 + $0x30] sm:$0xff] %vm418_vm1, %v2812_v9 }
 0x227   : > { %v3264_v1 = vpop.f32.mrb[18].mxu1 }
 0x228   : > { %v2661_v41 = vadd.f32 %v3264_v1, %v4684_v44  ;;  %v2655_v11 = vpop.f32.mrb[19].mxu1 }
 0x229   : > { %v2656_v47 = vadd.f32 %v4684_v44, %v2655_v11 }
 0x22a   : > { %v2815_v53 = vadd.f32 %v2783_v29, %v2661_v41  ;;  %v2799_v41 = vld [vmem:[%s4679_s16 + $0xc8] sm:$0xff] }
 0x22b   : > { %v2814_v17 = vadd.f32 %v2782_v0, %v2656_v47  ;;  %v2798_v47 = vld [vmem:[%s4679_s16 + $0xc0] sm:$0xff] }
 0x22c   : > { %2847 = vst.msk [vmem:[%s4692_s20 + $0x48] sm:$0xff] %vm418_vm1, %v2815_v53 }
 0x22d   : > { %2846 = vst.msk [vmem:[%s4692_s20 + $0x40] sm:$0xff] %vm418_vm1, %v2814_v17 }
 0x232   : > { %v3267_v23 = vpop.f32.mrb[20].mxu1 }
 0x233   : > { %v2671_v35 = vadd.f32 %v3267_v23, %v4684_v44  ;;  %v2665_v36 = vpop.f32.mrb[21].mxu1 }
 0x234   : > { %v2666_v24 = vadd.f32 %v4684_v44, %v2665_v36 }
 0x235   : > { %v2817_v3 = vadd.f32 %v2785_v34, %v2671_v35  ;;  %v2801_v35 = vld [vmem:[%s4679_s16 + $0xd8] sm:$0xff] }
 0x236   : > { %v2816_v54 = vadd.f32 %v2784_v56, %v2666_v24  ;;  %v2800_v24 = vld [vmem:[%s4679_s16 + $0xd0] sm:$0xff] }
 0x237   : > { %2849 = vst.msk [vmem:[%s4692_s20 + $0x58] sm:$0xff] %vm418_vm1, %v2817_v3 }
 0x238   : > { %2848 = vst.msk [vmem:[%s4692_s20 + $0x50] sm:$0xff] %vm418_vm1, %v2816_v54 }
 0x243   : > { %v3270_v38 = vpop.f32.mrb[22].mxu1 }
 0x244   : > { %v2681_v21 = vadd.f32 %v3270_v38, %v4684_v44  ;;  %v2675_v32 = vpop.f32.mrb[23].mxu1 }
 0x245   : > { %v2676_v22 = vadd.f32 %v4684_v44, %v2675_v32 }
 0x246   : > { %v2819_v28 = vadd.f32 %v2787_v15, %v2681_v21  ;;  %v2803_v21 = vld [vmem:[%s4679_s16 + $0xe8] sm:$0xff] }
 0x247   : > { %v2818_v51 = vadd.f32 %v2786_v19, %v2676_v22  ;;  %v2802_v22 = vld [vmem:[%s4679_s16 + $0xe0] sm:$0xff] }
 0x248   : > { %2851 = vst.msk [vmem:[%s4692_s20 + $0x68] sm:$0xff] %vm418_vm1, %v2819_v28 }
 0x249   : > { %2850 = vst.msk [vmem:[%s4692_s20 + $0x60] sm:$0xff] %vm418_vm1, %v2818_v51 }
 0x24d   : > { %v3273_v43 = vpop.f32.mrb[24].mxu1 }
 0x24e   : > { %v2691_v30 = vadd.f32 %v3273_v43, %v4684_v44  ;;  %v2685_v5 = vpop.f32.mrb[25].mxu1 }
 0x24f   : > { %v2686_v57 = vadd.f32 %v4684_v44, %v2685_v5 }
 0x250   : > { %v2821_v31 = vadd.f32 %v2789_v39, %v2691_v30  ;;  %v2805_v30 = vld [vmem:[%s4679_s16 + $0xf8] sm:$0xff] }
 0x251   : > { %v2820_v25 = vadd.f32 %v2788_v62, %v2686_v57  ;;  %v2804_v57 = vld [vmem:[%s4679_s16 + $0xf0] sm:$0xff] }
 0x252   : > { %2853 = vst.msk [vmem:[%s4692_s20 + $0x78] sm:$0xff] %vm418_vm1, %v2821_v31 }
 0x253   : > { %2852 = vst.msk [vmem:[%s4692_s20 + $0x70] sm:$0xff] %vm418_vm1, %v2820_v25 }
 0x257   : > { %v3276_v10 = vpop.f32.mrb[26].mxu1 }
 0x258   : > { %v2701_v2 = vadd.f32 %v3276_v10, %v4684_v44  ;;  %v2695_v26 = vpop.f32.mrb[27].mxu1 }
 0x259   : > { %v2696_v27 = vadd.f32 %v4684_v44, %v2695_v26 }
 0x25a   : > { %v2823_v4 = vadd.f32 %v2791_v33, %v2701_v2 }
 0x25b   : > { %v2822_v46 = vadd.f32 %v2790_v18, %v2696_v27 }
 0x25c   : > { %2855 = vst.msk [vmem:[%s4692_s20 + $0x88] sm:$0xff] %vm418_vm1, %v2823_v4 }
 0x25d   : > { %2854 = vst.msk [vmem:[%s4692_s20 + $0x80] sm:$0xff] %vm418_vm1, %v2822_v46 }
 0x261   : > { %v3279_v58 = vpop.f32.mrb[28].mxu1 }
 0x262   : > { %v2711_v61 = vadd.f32 %v3279_v58, %v4684_v44  ;;  %v2705_v6 = vpop.f32.mrb[29].mxu1 }
 0x263   : > { %v2706_v7 = vadd.f32 %v4684_v44, %v2705_v6 }
 0x264   : > { %v2825_v37 = vadd.f32 %v2793_v14, %v2711_v61 }
 0x265   : > { %v2824_v40 = vadd.f32 %v2792_v16, %v2706_v7 }
 0x266   : > { %2857 = vst.msk [vmem:[%s4692_s20 + $0x98] sm:$0xff] %vm418_vm1, %v2825_v37 }
 0x267   : > { %2856 = vst.msk [vmem:[%s4692_s20 + $0x90] sm:$0xff] %vm418_vm1, %v2824_v40 }
 0x26b   : > { %v3282_v59 = vpop.f32.mrb[30].mxu1 }
 0x26c   : > { %v2721_v48 = vadd.f32 %v3282_v59, %v4684_v44  ;;  %v2715_v13 = vpop.f32.mrb[31].mxu1 }
 0x26d   : > { %v2716_v8 = vadd.f32 %v4684_v44, %v2715_v13 }
 0x26e   : > { %v2827_v63 = vadd.f32 %v2795_v12, %v2721_v48 }
 0x26f   : > { %v2826_v55 = vadd.f32 %v2794_v45, %v2716_v8 }
 0x270   : > { %2859 = vst.msk [vmem:[%s4692_s20 + $0xa8] sm:$0xff] %vm418_vm1, %v2827_v63 }
 0x271   : > { %2858 = vst.msk [vmem:[%s4692_s20 + $0xa0] sm:$0xff] %vm418_vm1, %v2826_v55 }
 0x275   : > { %v3285_v20 = vpop.f32.mrb[32].mxu1 }
 0x276   : > { %v2731_v49 = vadd.f32 %v3285_v20, %v4684_v44  ;;  %v2725_v42 = vpop.f32.mrb[33].mxu1 }
 0x277   : > { %v2726_v50 = vadd.f32 %v4684_v44, %v2725_v42 }
 0x278   : > { %v2829_v9 = vadd.f32 %v2797_v60, %v2731_v49 }
 0x279   : > { %v2828_v1 = vadd.f32 %v2796_v52, %v2726_v50 }
 0x27a   : > { %2861 = vst.msk [vmem:[%s4692_s20 + $0xb8] sm:$0xff] %vm418_vm1, %v2829_v9 }
 0x27b   : > { %2860 = vst.msk [vmem:[%s4692_s20 + $0xb0] sm:$0xff] %vm418_vm1, %v2828_v1 }
 0x27f   : > { %v3288_v29 = vpop.f32.mrb[34].mxu1 }
 0x280   : > { %v2741_v11 = vadd.f32 %v3288_v29, %v4684_v44  ;;  %v2735_v0 = vpop.f32.mrb[35].mxu1 }
 0x281   : > { %v2736_v53 = vadd.f32 %v4684_v44, %v2735_v0 }
 0x282   : > { %v2831_v17 = vadd.f32 %v2799_v41, %v2741_v11 }
 0x283   : > { %v2830_v23 = vadd.f32 %v2798_v47, %v2736_v53 }
 0x284   : > { %2863 = vst.msk [vmem:[%s4692_s20 + $0xc8] sm:$0xff] %vm418_vm1, %v2831_v17 }
 0x285   : > { %2862 = vst.msk [vmem:[%s4692_s20 + $0xc0] sm:$0xff] %vm418_vm1, %v2830_v23 }
 0x289   : > { %v3291_v34 = vpop.f32.mrb[36].mxu1 }
 0x28a   : > { %v2751_v36 = vadd.f32 %v3291_v34, %v4684_v44  ;;  %v2745_v56 = vpop.f32.mrb[37].mxu1 }
 0x28b   : > { %v2746_v3 = vadd.f32 %v4684_v44, %v2745_v56 }
 0x28c   : > { %v2833_v54 = vadd.f32 %v2801_v35, %v2751_v36 }
 0x28d   : > { %v2832_v38 = vadd.f32 %v2800_v24, %v2746_v3 }
 0x28e   : > { %2865 = vst.msk [vmem:[%s4692_s20 + $0xd8] sm:$0xff] %vm418_vm1, %v2833_v54 }
 0x28f   : > { %2864 = vst.msk [vmem:[%s4692_s20 + $0xd0] sm:$0xff] %vm418_vm1, %v2832_v38 }
 0x293   : > { %v3294_v15 = vpop.f32.mrb[38].mxu1 }
 0x294   : > { %v2761_v32 = vadd.f32 %v3294_v15, %v4684_v44  ;;  %v2755_v19 = vpop.f32.mrb[39].mxu1 }
 0x295   : > { %v2756_v28 = vadd.f32 %v4684_v44, %v2755_v19 }
 0x296   : > { %v2835_v51 = vadd.f32 %v2803_v21, %v2761_v32 }
 0x297   : > { %v2834_v43 = vadd.f32 %v2802_v22, %v2756_v28 }
 0x298   : > { %2867 = vst.msk [vmem:[%s4692_s20 + $0xe8] sm:$0xff] %vm418_vm1, %v2835_v51 }
 0x299   : > { %2866 = vst.msk [vmem:[%s4692_s20 + $0xe0] sm:$0xff] %vm418_vm1, %v2834_v43 }
 0x29d   : > { %v3297_v39 = vpop.f32.mrb[40].mxu1 }
 0x29e   : > { %v2771_v5 = vadd.f32 %v3297_v39, %v4684_v44  ;;  %v2765_v62 = vpop.f32.mrb[41].mxu1 }
 0x29f   : > { %v2766_v31 = vadd.f32 %v4684_v44, %v2765_v62 }
 0x2a0   : > { %v2837_v25 = vadd.f32 %v2805_v30, %v2771_v5 }
 0x2a1   : > { %v2836_v10 = vadd.f32 %v2804_v57, %v2766_v31 }
 0x2a2   : > { %2869 = vst.msk [vmem:[%s4692_s20 + $0xf8] sm:$0xff] %vm418_vm1, %v2837_v25 }
 0x2a3   : > { %2868 = vst.msk [vmem:[%s4692_s20 + $0xf0] sm:$0xff] %vm418_vm1, %v2836_v10 }
 0x2a4 PF: > { %s18_s29 = sadd.s32 1, %s3363_s29   ;;  %s4837_s27 = smov %s3359_s28 }
 0x2a5   : > { %p15_p6 = scmp.ge.s32.totalorder %s18_s29, 4   ;;  %s4838_s28 = smov %s4840_s30 }
 0x2a7   :  { %17 = sbr.rel (!%p15_p6) target bundleno = 2 (0x2), region = 96 }

</bundles_post_ra>
